<compile_context>
chip_gen: v5e
topology: v5e:2x2
jax: 0.10.0
libtpu: 0.0.40
codegen_flags: <defaults>
</compile_context>

<pallas_src>
import functools

import numpy as np
import jax
import jax.numpy as jnp
from jax import lax
from jax.experimental import pallas as pl
from jax.experimental.pallas import tpu as pltpu


# MXU-native matmul input dtype on v5e/v6e/v7x; accumulation stays f32 via
# preferred_element_type.  LayerNorm / softmax / GELU elementwise math stays
# f32 (v5e has no bf16 VPU/EUP, and it keeps numerics tight on all chips).
MATMUL_DTYPE = jnp.bfloat16


# ----------------------------- Pallas kernel ------------------------------ #

def _block_kernel(n_head,
                  x_ref,
                  ln1_g_ref, ln1_b_ref,
                  w_q_ref, b_q_ref, w_k_ref, b_k_ref, w_v_ref, b_v_ref,
                  w_ao_ref, b_ao_ref,
                  ln2_g_ref, ln2_b_ref,
                  w_fc_ref, b_fc_ref,
                  w_mo_ref, b_mo_ref,
                  o_ref,
                  h1_sc, q_sc, k_cache, v_cache, m_sc, l_sc, acc_sc):
    qi = pl.program_id(1)            # query-tile index
    ki = pl.program_id(2)            # kv-tile index (innermost, "arbitrary")
    nk = pl.num_programs(2)

    x = x_ref[0]                     # (tile, C) rows of the current q tile
    tile, C = x.shape
    H = n_head
    Dh = C // H
    cdt = MATMUL_DTYPE

    def layernorm(z, g, b):
        mu = jnp.mean(z, axis=-1, keepdims=True)
        var = jnp.mean((z - mu) ** 2, axis=-1, keepdims=True)
        return (z - mu) * lax.rsqrt(var + 1e-5) * g + b

    # ---- once per (b, q-tile): LN1 + q projection, reset flash state ------
    @pl.when(ki == 0)
    def _init():
        h1 = layernorm(x, ln1_g_ref[0], ln1_b_ref[0])            # f32
        h1b = h1.astype(cdt)
        h1_sc[...] = h1b                                         # reused at ki == qi
        q = jnp.dot(h1b, w_q_ref[...],
                    preferred_element_type=jnp.float32) + b_q_ref[0]
        q = q * (1.0 / float(np.sqrt(Dh)))                       # fold softmax scale
        q_sc[...] = jnp.transpose(q.reshape(tile, H, Dh), (1, 0, 2)).astype(cdt)
        m_sc[...] = jnp.full_like(m_sc, -1e30)
        l_sc[...] = jnp.zeros_like(l_sc)
        acc_sc[...] = jnp.zeros_like(acc_sc)

    # ---- once per kv tile (first use = diagonal step): project + cache ----
    @pl.when(ki == qi)
    def _project_kv():
        h1b = h1_sc[...]                                         # LN1 of these rows
        k = jnp.dot(h1b, w_k_ref[...],
                    preferred_element_type=jnp.float32) + b_k_ref[0]
        v = jnp.dot(h1b, w_v_ref[...],
                    preferred_element_type=jnp.float32) + b_v_ref[0]
        k_cache[ki] = jnp.transpose(k.reshape(tile, H, Dh), (1, 0, 2)).astype(cdt)
        v_cache[ki] = jnp.transpose(v.reshape(tile, H, Dh), (1, 0, 2)).astype(cdt)

    # ---- flash step; tiles fully above the causal diagonal are skipped ----
    @pl.when(ki <= qi)
    def _flash_step():
        k_h = k_cache[ki]                                        # (H, tile, Dh) bf16
        v_h = v_cache[ki]
        s = jnp.einsum("hqd,hkd->hqk", q_sc[...], k_h,
                       preferred_element_type=jnp.float32)       # (H, tile, tile) f32
        # Per-tile causal mask from small (tile, tile) iotas; only the diagonal
        # tile actually needs it (below-diagonal tiles get an all-True predicate).
        row = lax.broadcasted_iota(jnp.int32, (tile, tile), 0)
        col = lax.broadcasted_iota(jnp.int32, (tile, tile), 1)
        allowed = jnp.logical_or(col <= row, ki < qi)[None]
        # -1e30 is safe because the scores stay in f32 (would overflow bf16).
        s = jnp.where(allowed, s, -1e30)

        m_prev = m_sc[...]
        m_new = jnp.maximum(m_prev, jnp.max(s, axis=-1, keepdims=True))
        alpha = jnp.exp(m_prev - m_new)
        p = jnp.exp(s - m_new)                                   # un-normalized probs
        l_sc[...] = alpha * l_sc[...] + jnp.sum(p, axis=-1, keepdims=True)
        acc_sc[...] = alpha * acc_sc[...] + jnp.einsum(
            "hqk,hkd->hqd", p.astype(cdt), v_h,
            preferred_element_type=jnp.float32)                  # (H, tile, Dh) f32
        m_sc[...] = m_new

    # ---- finalize: normalize, out-proj, residual, LN2, MLP, residual ------
    @pl.when(ki == nk - 1)
    def _finalize():
        # Normalize AFTER the PV matmuls: O(H*tile) exact reciprocals instead
        # of an O(H*tile^2) broadcast divide on the probabilities.
        y = acc_sc[...] * pl.reciprocal(l_sc[...], approx=False)   # (H, tile, Dh)
        y = jnp.transpose(y, (1, 0, 2)).reshape(tile, C)           # once per q tile
        attn = jnp.dot(y.astype(cdt), w_ao_ref[...],
                       preferred_element_type=jnp.float32) + b_ao_ref[0]
        x1 = x + attn

        h2 = layernorm(x1, ln2_g_ref[0], ln2_b_ref[0])
        f = jnp.dot(h2.astype(cdt), w_fc_ref[...],
                    preferred_element_type=jnp.float32) + b_fc_ref[0]
        # GELU(approximate='tanh') in f32 (tanh goes to the EUP slot).
        g = 0.5 * f * (1.0 + jnp.tanh(0.7978845608028654 *
                                      (f + 0.044715 * f * f * f)))
        m = jnp.dot(g.astype(cdt), w_mo_ref[...],
                    preferred_element_type=jnp.float32) + b_mo_ref[0]
        o_ref[0] = (x1 + m).astype(o_ref.dtype)


# ------------------------------- wrapper ----------------------------------- #

def _pick_tile(T):
    # Prefer 256-row tiles (amortizes the Dh-sized contraction across the
    # 2x256x256 MXU on v6e/v7x); 128 already saturates v5e's 128x128 MXU.
    for t in (256, 128, 64, 32, 16, 8):
        if T % t == 0:
            return t
    return T                       # tiny/odd T: single full-sequence tile


def _resident_spec(arr):
    # Whole-array VMEM-resident weight.  Its block index never changes across
    # the grid, so request a single buffer (default double buffering would
    # hold two copies of every weight - critical headroom on v7x's 64 MiB).
    nd = arr.ndim
    idx = lambda b, qi, ki, _nd=nd: (0,) * _nd
    try:
        return pl.BlockSpec(arr.shape, idx, pipeline_mode=pl.Buffered(1))
    except (AttributeError, TypeError):
        return pl.BlockSpec(arr.shape, idx)


def block_forward(x, params, n_head, *, tile=None, vmem_limit_bytes=None):
    B, T, C = x.shape
    assert C % n_head == 0
    H = n_head
    Dh = C // H
    if tile is None:
        tile = _pick_tile(T)
    assert T % tile == 0, (T, tile)
    nq = T // tile

    # Split the fused qkv projection once outside the kernel so q (per q tile)
    # and k/v (per kv tile) can be projected independently.
    w_qkv, b_qkv = params["w_qkv"], params["b_qkv"]
    w_q, w_k, w_v = w_qkv[:, :C], w_qkv[:, C:2 * C], w_qkv[:, 2 * C:]
    b_q, b_k, b_v = b_qkv[:, :C], b_qkv[:, C:2 * C], b_qkv[:, 2 * C:]

    weights = [params["ln1_g"], params["ln1_b"],
               w_q, b_q, w_k, b_k, w_v, b_v,
               params["w_ao"], params["b_ao"],
               params["ln2_g"], params["ln2_b"],
               params["w_fc"], params["b_fc"],
               params["w_mo"], params["b_mo"]]

    if vmem_limit_bytes is None:
        # Per-generation budget: ~80% of physical VMEM (v5e/v6e: 128 MiB,
        # v7x: 64 MiB) instead of a flat clamp that equals v7x's capacity.
        try:
            cap = int(pltpu.get_tpu_info().vmem_capacity_bytes)
        except Exception:
            cap = 64 * 2 ** 20          # conservative fallback (v7x per-core)
        vmem_limit_bytes = int(0.8 * cap)

    kernel = functools.partial(_block_kernel, n_head)

    return pl.pallas_call(
        kernel,
        out_shape=jax.ShapeDtypeStruct((B, T, C), x.dtype),
        grid_spec=pltpu.PrefetchScalarGridSpec(
            num_scalar_prefetch=0,
            grid=(B, nq, nq),
            in_specs=[pl.BlockSpec((1, tile, C), lambda b, qi, ki: (b, qi, 0))]
                     + [_resident_spec(w) for w in weights],
            out_specs=pl.BlockSpec((1, tile, C), lambda b, qi, ki: (b, qi, 0)),
            scratch_shapes=[
                pltpu.VMEM((tile, C), MATMUL_DTYPE),           # h1 = LN1(x_q)
                pltpu.VMEM((H, tile, Dh), MATMUL_DTYPE),       # q (scaled, head-major)
                pltpu.VMEM((nq, H, tile, Dh), MATMUL_DTYPE),   # k cache
                pltpu.VMEM((nq, H, tile, Dh), MATMUL_DTYPE),   # v cache
                pltpu.VMEM((H, tile, 1), jnp.float32),         # running max m
                pltpu.VMEM((H, tile, 1), jnp.float32),         # running sum l
                pltpu.VMEM((H, tile, Dh), jnp.float32),        # un-normalized acc
            ]),
        # The k/v cache carries state across q tiles, so the q-tile axis must
        # stay sequential ("arbitrary"); batch is the megacore-parallel axis.
        compiler_params=pltpu.CompilerParams(
            dimension_semantics=("parallel", "arbitrary", "arbitrary"),
            vmem_limit_bytes=vmem_limit_bytes),
    )(x, *weights)


# -------------------------- pure-JAX reference ----------------------------- #

def block_reference(x, params, n_head):
    B, T, C = x.shape
    H = n_head
    Dh = C // H

    w_qkv = params["w_qkv"].astype(jnp.float32)
    w_ao = params["w_ao"].astype(jnp.float32)
    w_fc = params["w_fc"].astype(jnp.float32)
    w_mo = params["w_mo"].astype(jnp.float32)

    def ln(z, g, b):
        mu = jnp.mean(z, axis=-1, keepdims=True)
        var = jnp.mean((z - mu) ** 2, axis=-1, keepdims=True)
        return (z - mu) / jnp.sqrt(var + 1e-5) * g + b

    h = ln(x, params["ln1_g"][0], params["ln1_b"][0])
    qkv = h @ w_qkv + params["b_qkv"][0]
    q, k, v = jnp.split(qkv, 3, axis=-1)
    q = q.reshape(B, T, H, Dh).transpose(0, 2, 1, 3)
    k = k.reshape(B, T, H, Dh).transpose(0, 2, 1, 3)
    v = v.reshape(B, T, H, Dh).transpose(0, 2, 1, 3)
    s = jnp.einsum("bhtd,bhsd->bhts", q, k) / np.sqrt(Dh)
    mask = np.tril(np.ones((T, T), dtype=bool))
    s = jnp.where(mask, s, -jnp.inf)
    p = jax.nn.softmax(s, axis=-1)
    y = jnp.einsum("bhts,bhsd->bhtd", p, v)
    y = y.transpose(0, 2, 1, 3).reshape(B, T, C)
    y = y @ w_ao + params["b_ao"][0]
    x = x + y

    h2 = ln(x, params["ln2_g"][0], params["ln2_b"][0])
    f = h2 @ w_fc + params["b_fc"][0]
    g = 0.5 * f * (1.0 + jnp.tanh(0.7978845608028654 * (f + 0.044715 * f ** 3)))
    m = g @ w_mo + params["b_mo"][0]
    return x + m


# ---------------------------------- main ------------------------------------ #

if __name__ == "__main__":
    B, T, C, n_head = 2, 8, 32, 4     # small shapes consistent with the module

    key = jax.random.PRNGKey(0)
    ks = jax.random.split(key, 10)

    x = jax.random.normal(ks[0], (B, T, C), dtype=jnp.float32)

    std = 0.02
    params = {
        # LayerNorm params stored as (1, C) for a lane-friendly layout, f32.
        "ln1_g": jnp.ones((1, C), jnp.float32),
        "ln1_b": jnp.zeros((1, C), jnp.float32),
        "ln2_g": jnp.ones((1, C), jnp.float32),
        "ln2_b": jnp.zeros((1, C), jnp.float32),
        # Matmul weights stored in bf16 (MXU-native, halves VMEM/HBM bytes).
        "w_qkv": (std * jax.random.normal(ks[1], (C, 3 * C))).astype(MATMUL_DTYPE),
        "b_qkv": (std * jax.random.normal(ks[5], (1, 3 * C))).astype(jnp.float32),
        "w_ao":  (std * jax.random.normal(ks[2], (C, C))).astype(MATMUL_DTYPE),
        "b_ao":  (std * jax.random.normal(ks[6], (1, C))).astype(jnp.float32),
        "w_fc":  (std * jax.random.normal(ks[3], (C, 4 * C))).astype(MATMUL_DTYPE),
        "b_fc":  (std * jax.random.normal(ks[7], (1, 4 * C))).astype(jnp.float32),
        "w_mo":  (std * jax.random.normal(ks[4], (4 * C, C))).astype(MATMUL_DTYPE),
        "b_mo":  (std * jax.random.normal(ks[8], (1, C))).astype(jnp.float32),
    }

    out = jax.block_until_ready(block_forward(x, params, n_head))
    ref = jax.block_until_ready(block_reference(x, params, n_head))

    # bf16 matmul inputs (f32 accumulation) => slightly loosened tolerance.
    np.testing.assert_allclose(np.asarray(out), np.asarray(ref),
                               rtol=2e-2, atol=2e-2)

    print("KERNEL_OK")
</pallas_src>

<mosaic_0001>
module attributes {stable_mosaic.version = 11 : i64} {
  func.func @_block_kernel(%arg0: i32, %arg1: i32, %arg2: i32, %arg3: memref<1x8x32xf32, #tpu.memory_space<vmem>>, %arg4: memref<1x32xf32, #tpu.memory_space<vmem>>, %arg5: memref<1x32xf32, #tpu.memory_space<vmem>>, %arg6: memref<32x32xbf16, #tpu.memory_space<vmem>>, %arg7: memref<1x32xf32, #tpu.memory_space<vmem>>, %arg8: memref<32x32xbf16, #tpu.memory_space<vmem>>, %arg9: memref<1x32xf32, #tpu.memory_space<vmem>>, %arg10: memref<32x32xbf16, #tpu.memory_space<vmem>>, %arg11: memref<1x32xf32, #tpu.memory_space<vmem>>, %arg12: memref<32x32xbf16, #tpu.memory_space<vmem>>, %arg13: memref<1x32xf32, #tpu.memory_space<vmem>>, %arg14: memref<1x32xf32, #tpu.memory_space<vmem>>, %arg15: memref<1x32xf32, #tpu.memory_space<vmem>>, %arg16: memref<32x128xbf16, #tpu.memory_space<vmem>>, %arg17: memref<1x128xf32, #tpu.memory_space<vmem>>, %arg18: memref<128x32xbf16, #tpu.memory_space<vmem>>, %arg19: memref<1x32xf32, #tpu.memory_space<vmem>>, %arg20: memref<1x8x32xf32, #tpu.memory_space<vmem>>, %arg21: memref<8x32xbf16, #tpu.memory_space<vmem>>, %arg22: memref<4x8x8xbf16, #tpu.memory_space<vmem>>, %arg23: memref<1x4x8x8xbf16, #tpu.memory_space<vmem>>, %arg24: memref<1x4x8x8xbf16, #tpu.memory_space<vmem>>, %arg25: memref<4x8x1xf32, #tpu.memory_space<vmem>>, %arg26: memref<4x8x1xf32, #tpu.memory_space<vmem>>, %arg27: memref<4x8x8xf32, #tpu.memory_space<vmem>>) attributes {dimension_semantics = [#tpu.dimension_semantics<parallel>, #tpu.dimension_semantics<arbitrary>, #tpu.dimension_semantics<arbitrary>], iteration_bounds = array<i64: 2, 1, 1>, scalar_prefetch = 0 : i64, scratch_operands = 7 : i64, tpu.core_type = #tpu.core_type<tc>, window_params = [{transform_indices = @transform_0, window_bounds = array<i64: 1, 8, 32>}, {pipeline_mode = #tpu.pipeline_mode<synchronous>, transform_indices = @transform_1, window_bounds = array<i64: 1, 32>}, {pipeline_mode = #tpu.pipeline_mode<synchronous>, transform_indices = @transform_2, window_bounds = array<i64: 1, 32>}, {pipeline_mode = #tpu.pipeline_mode<synchronous>, transform_indices = @transform_3, window_bounds = array<i64: 32, 32>}, {pipeline_mode = #tpu.pipeline_mode<synchronous>, transform_indices = @transform_4, window_bounds = array<i64: 1, 32>}, {pipeline_mode = #tpu.pipeline_mode<synchronous>, transform_indices = @transform_5, window_bounds = array<i64: 32, 32>}, {pipeline_mode = #tpu.pipeline_mode<synchronous>, transform_indices = @transform_6, window_bounds = array<i64: 1, 32>}, {pipeline_mode = #tpu.pipeline_mode<synchronous>, transform_indices = @transform_7, window_bounds = array<i64: 32, 32>}, {pipeline_mode = #tpu.pipeline_mode<synchronous>, transform_indices = @transform_8, window_bounds = array<i64: 1, 32>}, {pipeline_mode = #tpu.pipeline_mode<synchronous>, transform_indices = @transform_9, window_bounds = array<i64: 32, 32>}, {pipeline_mode = #tpu.pipeline_mode<synchronous>, transform_indices = @transform_10, window_bounds = array<i64: 1, 32>}, {pipeline_mode = #tpu.pipeline_mode<synchronous>, transform_indices = @transform_11, window_bounds = array<i64: 1, 32>}, {pipeline_mode = #tpu.pipeline_mode<synchronous>, transform_indices = @transform_12, window_bounds = array<i64: 1, 32>}, {pipeline_mode = #tpu.pipeline_mode<synchronous>, transform_indices = @transform_13, window_bounds = array<i64: 32, 128>}, {pipeline_mode = #tpu.pipeline_mode<synchronous>, transform_indices = @transform_14, window_bounds = array<i64: 1, 128>}, {pipeline_mode = #tpu.pipeline_mode<synchronous>, transform_indices = @transform_15, window_bounds = array<i64: 128, 32>}, {pipeline_mode = #tpu.pipeline_mode<synchronous>, transform_indices = @transform_16, window_bounds = array<i64: 1, 32>}, {transform_indices = @transform_17, window_bounds = array<i64: 1, 8, 32>}]} {
    %c0 = arith.constant 0 : index
    %c0_0 = arith.constant 0 : index
    %c0_1 = arith.constant 0 : index
    %0 = vector.load %arg3[%c0, %c0_0, %c0_1] : memref<1x8x32xf32, #tpu.memory_space<vmem>>, vector<1x8x32xf32>
    %1 = vector.shape_cast %0 : vector<1x8x32xf32> to vector<8x32xf32>
    %c0_i32 = arith.constant 0 : i32
    %2 = arith.cmpi eq, %arg2, %c0_i32 : i32
    %3 = arith.extui %2 : i1 to i32
    %c0_i32_2 = arith.constant 0 : i32
    %4 = arith.cmpi ne, %3, %c0_i32_2 : i32
    scf.if %4 {
      %c0_7 = arith.constant 0 : index
      %c0_8 = arith.constant 0 : index
      %14 = vector.load %arg4[%c0_7, %c0_8] : memref<1x32xf32, #tpu.memory_space<vmem>>, vector<1x32xf32>
      %15 = vector.shape_cast %14 : vector<1x32xf32> to vector<32xf32>
      %c0_9 = arith.constant 0 : index
      %c0_10 = arith.constant 0 : index
      %16 = vector.load %arg5[%c0_9, %c0_10] : memref<1x32xf32, #tpu.memory_space<vmem>>, vector<1x32xf32>
      %17 = vector.shape_cast %16 : vector<1x32xf32> to vector<32xf32>
      %cst = arith.constant dense<0.000000e+00> : vector<8xf32>
      %18 = vector.multi_reduction <add>, %1, %cst [1] : vector<8x32xf32> to vector<8xf32>
      %19 = vector.shape_cast %18 : vector<8xf32> to vector<8x1xf32>
      %cst_11 = arith.constant 3.200000e+01 : f32
      %20 = vector.broadcast %cst_11 : f32 to vector<8x1xf32>
      %21 = arith.divf %19, %20 : vector<8x1xf32>
      %22 = vector.broadcast %21 : vector<8x1xf32> to vector<8x32xf32>
      %23 = arith.subf %1, %22 : vector<8x32xf32>
      %24 = arith.mulf %23, %23 : vector<8x32xf32>
      %cst_12 = arith.constant dense<0.000000e+00> : vector<8xf32>
      %25 = vector.multi_reduction <add>, %24, %cst_12 [1] : vector<8x32xf32> to vector<8xf32>
      %26 = vector.shape_cast %25 : vector<8xf32> to vector<8x1xf32>
      %cst_13 = arith.constant 3.200000e+01 : f32
      %27 = vector.broadcast %cst_13 : f32 to vector<8x1xf32>
      %28 = arith.divf %26, %27 : vector<8x1xf32>
      %29 = vector.broadcast %21 : vector<8x1xf32> to vector<8x32xf32>
      %30 = arith.subf %1, %29 : vector<8x32xf32>
      %cst_14 = arith.constant 9.99999974E-6 : f32
      %31 = vector.broadcast %cst_14 : f32 to vector<8x1xf32>
      %32 = arith.addf %28, %31 : vector<8x1xf32>
      %33 = math.rsqrt %32 : vector<8x1xf32>
      %34 = vector.broadcast %33 : vector<8x1xf32> to vector<8x32xf32>
      %35 = arith.mulf %30, %34 : vector<8x32xf32>
      %36 = vector.shape_cast %15 : vector<32xf32> to vector<1x32xf32>
      %37 = vector.broadcast %36 : vector<1x32xf32> to vector<8x32xf32>
      %38 = arith.mulf %35, %37 : vector<8x32xf32>
      %39 = vector.shape_cast %17 : vector<32xf32> to vector<1x32xf32>
      %40 = vector.broadcast %39 : vector<1x32xf32> to vector<8x32xf32>
      %41 = arith.addf %38, %40 : vector<8x32xf32>
      %42 = arith.truncf %41 : vector<8x32xf32> to vector<8x32xbf16>
      %c0_15 = arith.constant 0 : index
      %c0_16 = arith.constant 0 : index
      %43 = vector.load %arg21[%c0_15, %c0_16] : memref<8x32xbf16, #tpu.memory_space<vmem>>, vector<8x32xbf16>
      tpu.vector_store %arg21[%c0_15, %c0_16], %42 {strides = array<i32>} : memref<8x32xbf16, #tpu.memory_space<vmem>>, vector<8x32xbf16>,
      %c0_17 = arith.constant 0 : index
      %c0_18 = arith.constant 0 : index
      %44 = vector.load %arg6[%c0_17, %c0_18] : memref<32x32xbf16, #tpu.memory_space<vmem>>, vector<32x32xbf16>
      %cst_19 = arith.constant dense<0.000000e+00> : vector<8x32xf32>
      %45 = tpu.matmul %42, %44, %cst_19 {dimension_numbers = #tpu.dot_dimension_numbers<[1], [0], [0], [1], [0, 0, 1, 1], [], []>} : vector<8x32xbf16>, vector<32x32xbf16>, vector<8x32xf32> -> vector<8x32xf32>
      %c0_20 = arith.constant 0 : index
      %c0_21 = arith.constant 0 : index
      %46 = vector.load %arg7[%c0_20, %c0_21] : memref<1x32xf32, #tpu.memory_space<vmem>>, vector<1x32xf32>
      %47 = vector.shape_cast %46 : vector<1x32xf32> to vector<32xf32>
      %48 = vector.shape_cast %47 : vector<32xf32> to vector<1x32xf32>
      %49 = vector.broadcast %48 : vector<1x32xf32> to vector<8x32xf32>
      %50 = arith.addf %45, %49 : vector<8x32xf32>
      %cst_22 = arith.constant 0.353553385 : f32
      %51 = vector.broadcast %cst_22 : f32 to vector<8x32xf32>
      %52 = arith.mulf %50, %51 : vector<8x32xf32>
      %53 = vector.shape_cast %52 : vector<8x32xf32> to vector<8x4x8xf32>
      %54 = tpu.transpose %53, [1, 0, 2] : vector<8x4x8xf32> -> vector<4x8x8xf32>
      %55 = arith.truncf %54 : vector<4x8x8xf32> to vector<4x8x8xbf16>
      %c0_23 = arith.constant 0 : index
      %c0_24 = arith.constant 0 : index
      %c0_25 = arith.constant 0 : index
      %56 = vector.load %arg22[%c0_23, %c0_24, %c0_25] : memref<4x8x8xbf16, #tpu.memory_space<vmem>>, vector<4x8x8xbf16>
      tpu.vector_store %arg22[%c0_23, %c0_24, %c0_25], %55 {strides = array<i32>} : memref<4x8x8xbf16, #tpu.memory_space<vmem>>, vector<4x8x8xbf16>,
      %cst_26 = arith.constant -1.000000e+30 : f32
      %57 = vector.broadcast %cst_26 : f32 to vector<4x8x1xf32>
      %c0_27 = arith.constant 0 : index
      %c0_28 = arith.constant 0 : index
      %c0_29 = arith.constant 0 : index
      %58 = vector.load %arg25[%c0_27, %c0_28, %c0_29] : memref<4x8x1xf32, #tpu.memory_space<vmem>>, vector<4x8x1xf32>
      tpu.vector_store %arg25[%c0_27, %c0_28, %c0_29], %57 {strides = array<i32>} : memref<4x8x1xf32, #tpu.memory_space<vmem>>, vector<4x8x1xf32>,
      %cst_30 = arith.constant 0.000000e+00 : f32
      %59 = vector.broadcast %cst_30 : f32 to vector<4x8x1xf32>
      %c0_31 = arith.constant 0 : index
      %c0_32 = arith.constant 0 : index
      %c0_33 = arith.constant 0 : index
      %60 = vector.load %arg26[%c0_31, %c0_32, %c0_33] : memref<4x8x1xf32, #tpu.memory_space<vmem>>, vector<4x8x1xf32>
      tpu.vector_store %arg26[%c0_31, %c0_32, %c0_33], %59 {strides = array<i32>} : memref<4x8x1xf32, #tpu.memory_space<vmem>>, vector<4x8x1xf32>,
      %cst_34 = arith.constant 0.000000e+00 : f32
      %61 = vector.broadcast %cst_34 : f32 to vector<4x8x8xf32>
      %c0_35 = arith.constant 0 : index
      %c0_36 = arith.constant 0 : index
      %c0_37 = arith.constant 0 : index
      %62 = vector.load %arg27[%c0_35, %c0_36, %c0_37] : memref<4x8x8xf32, #tpu.memory_space<vmem>>, vector<4x8x8xf32>
      tpu.vector_store %arg27[%c0_35, %c0_36, %c0_37], %61 {strides = array<i32>} : memref<4x8x8xf32, #tpu.memory_space<vmem>>, vector<4x8x8xf32>,
    } else {
    }
    %5 = arith.cmpi eq, %arg2, %arg1 : i32
    %6 = arith.extui %5 : i1 to i32
    %c0_i32_3 = arith.constant 0 : i32
    %7 = arith.cmpi ne, %6, %c0_i32_3 : i32
    scf.if %7 {
      %c0_7 = arith.constant 0 : index
      %c0_8 = arith.constant 0 : index
      %14 = vector.load %arg21[%c0_7, %c0_8] : memref<8x32xbf16, #tpu.memory_space<vmem>>, vector<8x32xbf16>
      %c0_9 = arith.constant 0 : index
      %c0_10 = arith.constant 0 : index
      %15 = vector.load %arg8[%c0_9, %c0_10] : memref<32x32xbf16, #tpu.memory_space<vmem>>, vector<32x32xbf16>
      %cst = arith.constant dense<0.000000e+00> : vector<8x32xf32>
      %16 = tpu.matmul %14, %15, %cst {dimension_numbers = #tpu.dot_dimension_numbers<[1], [0], [0], [1], [0, 0, 1, 1], [], []>} : vector<8x32xbf16>, vector<32x32xbf16>, vector<8x32xf32> -> vector<8x32xf32>
      %c0_11 = arith.constant 0 : index
      %c0_12 = arith.constant 0 : index
      %17 = vector.load %arg9[%c0_11, %c0_12] : memref<1x32xf32, #tpu.memory_space<vmem>>, vector<1x32xf32>
      %18 = vector.shape_cast %17 : vector<1x32xf32> to vector<32xf32>
      %19 = vector.shape_cast %18 : vector<32xf32> to vector<1x32xf32>
      %20 = vector.broadcast %19 : vector<1x32xf32> to vector<8x32xf32>
      %21 = arith.addf %16, %20 : vector<8x32xf32>
      %c0_13 = arith.constant 0 : index
      %c0_14 = arith.constant 0 : index
      %22 = vector.load %arg10[%c0_13, %c0_14] : memref<32x32xbf16, #tpu.memory_space<vmem>>, vector<32x32xbf16>
      %cst_15 = arith.constant dense<0.000000e+00> : vector<8x32xf32>
      %23 = tpu.matmul %14, %22, %cst_15 {dimension_numbers = #tpu.dot_dimension_numbers<[1], [0], [0], [1], [0, 0, 1, 1], [], []>} : vector<8x32xbf16>, vector<32x32xbf16>, vector<8x32xf32> -> vector<8x32xf32>
      %c0_16 = arith.constant 0 : index
      %c0_17 = arith.constant 0 : index
      %24 = vector.load %arg11[%c0_16, %c0_17] : memref<1x32xf32, #tpu.memory_space<vmem>>, vector<1x32xf32>
      %25 = vector.shape_cast %24 : vector<1x32xf32> to vector<32xf32>
      %26 = vector.shape_cast %25 : vector<32xf32> to vector<1x32xf32>
      %27 = vector.broadcast %26 : vector<1x32xf32> to vector<8x32xf32>
      %28 = arith.addf %23, %27 : vector<8x32xf32>
      %29 = vector.shape_cast %21 : vector<8x32xf32> to vector<8x4x8xf32>
      %30 = tpu.transpose %29, [1, 0, 2] : vector<8x4x8xf32> -> vector<4x8x8xf32>
      %31 = arith.truncf %30 : vector<4x8x8xf32> to vector<4x8x8xbf16>
      %32 = arith.index_cast %arg2 : i32 to index
      %c0_18 = arith.constant 0 : index
      %c0_19 = arith.constant 0 : index
      %c0_20 = arith.constant 0 : index
      %33 = vector.load %arg23[%32, %c0_18, %c0_19, %c0_20] : memref<1x4x8x8xbf16, #tpu.memory_space<vmem>>, vector<1x4x8x8xbf16>
      %34 = vector.shape_cast %33 : vector<1x4x8x8xbf16> to vector<4x8x8xbf16>
      %35 = vector.shape_cast %31 : vector<4x8x8xbf16> to vector<1x4x8x8xbf16>
      tpu.vector_store %arg23[%32, %c0_18, %c0_19, %c0_20], %35 {strides = array<i32>} : memref<1x4x8x8xbf16, #tpu.memory_space<vmem>>, vector<1x4x8x8xbf16>,
      %36 = vector.shape_cast %28 : vector<8x32xf32> to vector<8x4x8xf32>
      %37 = tpu.transpose %36, [1, 0, 2] : vector<8x4x8xf32> -> vector<4x8x8xf32>
      %38 = arith.truncf %37 : vector<4x8x8xf32> to vector<4x8x8xbf16>
      %39 = arith.index_cast %arg2 : i32 to index
      %c0_21 = arith.constant 0 : index
      %c0_22 = arith.constant 0 : index
      %c0_23 = arith.constant 0 : index
      %40 = vector.load %arg24[%39, %c0_21, %c0_22, %c0_23] : memref<1x4x8x8xbf16, #tpu.memory_space<vmem>>, vector<1x4x8x8xbf16>
      %41 = vector.shape_cast %40 : vector<1x4x8x8xbf16> to vector<4x8x8xbf16>
      %42 = vector.shape_cast %38 : vector<4x8x8xbf16> to vector<1x4x8x8xbf16>
      tpu.vector_store %arg24[%39, %c0_21, %c0_22, %c0_23], %42 {strides = array<i32>} : memref<1x4x8x8xbf16, #tpu.memory_space<vmem>>, vector<1x4x8x8xbf16>,
    } else {
    }
    %8 = arith.cmpi sle, %arg2, %arg1 : i32
    %9 = arith.extui %8 : i1 to i32
    %c0_i32_4 = arith.constant 0 : i32
    %10 = arith.cmpi ne, %9, %c0_i32_4 : i32
    scf.if %10 {
      %14 = arith.index_cast %arg2 : i32 to index
      %c0_7 = arith.constant 0 : index
      %c0_8 = arith.constant 0 : index
      %c0_9 = arith.constant 0 : index
      %15 = vector.load %arg23[%14, %c0_7, %c0_8, %c0_9] : memref<1x4x8x8xbf16, #tpu.memory_space<vmem>>, vector<1x4x8x8xbf16>
      %16 = vector.shape_cast %15 : vector<1x4x8x8xbf16> to vector<4x8x8xbf16>
      %17 = arith.index_cast %arg2 : i32 to index
      %c0_10 = arith.constant 0 : index
      %c0_11 = arith.constant 0 : index
      %c0_12 = arith.constant 0 : index
      %18 = vector.load %arg24[%17, %c0_10, %c0_11, %c0_12] : memref<1x4x8x8xbf16, #tpu.memory_space<vmem>>, vector<1x4x8x8xbf16>
      %19 = vector.shape_cast %18 : vector<1x4x8x8xbf16> to vector<4x8x8xbf16>
      %c0_13 = arith.constant 0 : index
      %c0_14 = arith.constant 0 : index
      %c0_15 = arith.constant 0 : index
      %20 = vector.load %arg22[%c0_13, %c0_14, %c0_15] : memref<4x8x8xbf16, #tpu.memory_space<vmem>>, vector<4x8x8xbf16>
      "tpu.trace_start"() <{level = 10 : i32, message = "hqd,hkd->hqk"}> : () -> ()
      %cst = arith.constant dense<0.000000e+00> : vector<4x8x8xf32>
      %21 = tpu.matmul %20, %16, %cst {dimension_numbers = #tpu.dot_dimension_numbers<[2], [2], [1], [1], [0, 0, 0, 1, 1, 1], [0], [0]>} : vector<4x8x8xbf16>, vector<4x8x8xbf16>, vector<4x8x8xf32> -> vector<4x8x8xf32>
      "tpu.trace_stop"() : () -> ()
      %22 = tpu.iota {dimensions = array<i32: 0>} : vector<8x8xi32>
      %23 = tpu.iota {dimensions = array<i32: 1>} : vector<8x8xi32>
      %24 = arith.cmpi sle, %23, %22 : vector<8x8xi32>
      %25 = arith.cmpi slt, %arg2, %arg1 : i32
      %26 = vector.broadcast %25 : i1 to vector<8x8xi1>
      %27 = arith.ori %24, %26 : vector<8x8xi1>
      %28 = vector.shape_cast %27 : vector<8x8xi1> to vector<1x8x8xi1>
      %cst_16 = arith.constant -1.000000e+30 : f32
      %29 = vector.shape_cast %28 : vector<1x8x8xi1> to vector<1x8x8xi1>
      %30 = vector.broadcast %29 : vector<1x8x8xi1> to vector<4x8x8xi1>
      %31 = vector.broadcast %cst_16 : f32 to vector<4x8x8xf32>
      %32 = arith.select %30, %21, %31 : vector<4x8x8xi1>, vector<4x8x8xf32>
      %c0_17 = arith.constant 0 : index
      %c0_18 = arith.constant 0 : index
      %c0_19 = arith.constant 0 : index
      %33 = vector.load %arg25[%c0_17, %c0_18, %c0_19] : memref<4x8x1xf32, #tpu.memory_space<vmem>>, vector<4x8x1xf32>
      %cst_20 = arith.constant dense<0xFF800000> : vector<4x8xf32>
      %34 = vector.multi_reduction <maximumf>, %32, %cst_20 [2] : vector<4x8x8xf32> to vector<4x8xf32>
      %35 = vector.shape_cast %34 : vector<4x8xf32> to vector<4x8x1xf32>
      %36 = arith.maximumf %33, %35 : vector<4x8x1xf32>
      %37 = arith.subf %33, %36 : vector<4x8x1xf32>
      %38 = math.exp %37 : vector<4x8x1xf32>
      %39 = vector.broadcast %36 : vector<4x8x1xf32> to vector<4x8x8xf32>
      %40 = arith.subf %32, %39 : vector<4x8x8xf32>
      %41 = math.exp %40 : vector<4x8x8xf32>
      %c0_21 = arith.constant 0 : index
      %c0_22 = arith.constant 0 : index
      %c0_23 = arith.constant 0 : index
      %42 = vector.load %arg26[%c0_21, %c0_22, %c0_23] : memref<4x8x1xf32, #tpu.memory_space<vmem>>, vector<4x8x1xf32>
      %43 = arith.mulf %38, %42 : vector<4x8x1xf32>
      %cst_24 = arith.constant dense<0.000000e+00> : vector<4x8xf32>
      %44 = vector.multi_reduction <add>, %41, %cst_24 [2] : vector<4x8x8xf32> to vector<4x8xf32>
      %45 = vector.shape_cast %44 : vector<4x8xf32> to vector<4x8x1xf32>
      %46 = arith.addf %43, %45 : vector<4x8x1xf32>
      %c0_25 = arith.constant 0 : index
      %c0_26 = arith.constant 0 : index
      %c0_27 = arith.constant 0 : index
      %47 = vector.load %arg26[%c0_25, %c0_26, %c0_27] : memref<4x8x1xf32, #tpu.memory_space<vmem>>, vector<4x8x1xf32>
      tpu.vector_store %arg26[%c0_25, %c0_26, %c0_27], %46 {strides = array<i32>} : memref<4x8x1xf32, #tpu.memory_space<vmem>>, vector<4x8x1xf32>,
      %c0_28 = arith.constant 0 : index
      %c0_29 = arith.constant 0 : index
      %c0_30 = arith.constant 0 : index
      %48 = vector.load %arg27[%c0_28, %c0_29, %c0_30] : memref<4x8x8xf32, #tpu.memory_space<vmem>>, vector<4x8x8xf32>
      %49 = vector.broadcast %38 : vector<4x8x1xf32> to vector<4x8x8xf32>
      %50 = arith.mulf %49, %48 : vector<4x8x8xf32>
      %51 = arith.truncf %41 : vector<4x8x8xf32> to vector<4x8x8xbf16>
      "tpu.trace_start"() <{level = 10 : i32, message = "hqk,hkd->hqd"}> : () -> ()
      %cst_31 = arith.constant dense<0.000000e+00> : vector<4x8x8xf32>
      %52 = tpu.matmul %51, %19, %cst_31 {dimension_numbers = #tpu.dot_dimension_numbers<[2], [1], [1], [2], [0, 0, 0, 1, 1, 2], [0], [0]>} : vector<4x8x8xbf16>, vector<4x8x8xbf16>, vector<4x8x8xf32> -> vector<4x8x8xf32>
      "tpu.trace_stop"() : () -> ()
      %53 = arith.addf %50, %52 : vector<4x8x8xf32>
      %c0_32 = arith.constant 0 : index
      %c0_33 = arith.constant 0 : index
      %c0_34 = arith.constant 0 : index
      %54 = vector.load %arg27[%c0_32, %c0_33, %c0_34] : memref<4x8x8xf32, #tpu.memory_space<vmem>>, vector<4x8x8xf32>
      tpu.vector_store %arg27[%c0_32, %c0_33, %c0_34], %53 {strides = array<i32>} : memref<4x8x8xf32, #tpu.memory_space<vmem>>, vector<4x8x8xf32>,
      %c0_35 = arith.constant 0 : index
      %c0_36 = arith.constant 0 : index
      %c0_37 = arith.constant 0 : index
      %55 = vector.load %arg25[%c0_35, %c0_36, %c0_37] : memref<4x8x1xf32, #tpu.memory_space<vmem>>, vector<4x8x1xf32>
      tpu.vector_store %arg25[%c0_35, %c0_36, %c0_37], %36 {strides = array<i32>} : memref<4x8x1xf32, #tpu.memory_space<vmem>>, vector<4x8x1xf32>,
    } else {
    }
    %c0_i32_5 = arith.constant 0 : i32
    %11 = arith.cmpi eq, %arg2, %c0_i32_5 : i32
    %12 = arith.extui %11 : i1 to i32
    %c0_i32_6 = arith.constant 0 : i32
    %13 = arith.cmpi ne, %12, %c0_i32_6 : i32
    scf.if %13 {
      %c0_7 = arith.constant 0 : index
      %c0_8 = arith.constant 0 : index
      %c0_9 = arith.constant 0 : index
      %14 = vector.load %arg27[%c0_7, %c0_8, %c0_9] : memref<4x8x8xf32, #tpu.memory_space<vmem>>, vector<4x8x8xf32>
      %c0_10 = arith.constant 0 : index
      %c0_11 = arith.constant 0 : index
      %c0_12 = arith.constant 0 : index
      %15 = vector.load %arg26[%c0_10, %c0_11, %c0_12] : memref<4x8x1xf32, #tpu.memory_space<vmem>>, vector<4x8x1xf32>
      %16 = tpu.reciprocal %15 : vector<4x8x1xf32> -> vector<4x8x1xf32>
      %17 = vector.broadcast %16 : vector<4x8x1xf32> to vector<4x8x8xf32>
      %18 = arith.mulf %14, %17 : vector<4x8x8xf32>
      %19 = tpu.transpose %18, [1, 0, 2] : vector<4x8x8xf32> -> vector<8x4x8xf32>
      %20 = vector.shape_cast %19 : vector<8x4x8xf32> to vector<8x32xf32>
      %21 = arith.truncf %20 : vector<8x32xf32> to vector<8x32xbf16>
      %c0_13 = arith.constant 0 : index
      %c0_14 = arith.constant 0 : index
      %22 = vector.load %arg12[%c0_13, %c0_14] : memref<32x32xbf16, #tpu.memory_space<vmem>>, vector<32x32xbf16>
      %cst = arith.constant dense<0.000000e+00> : vector<8x32xf32>
      %23 = tpu.matmul %21, %22, %cst {dimension_numbers = #tpu.dot_dimension_numbers<[1], [0], [0], [1], [0, 0, 1, 1], [], []>} : vector<8x32xbf16>, vector<32x32xbf16>, vector<8x32xf32> -> vector<8x32xf32>
      %c0_15 = arith.constant 0 : index
      %c0_16 = arith.constant 0 : index
      %24 = vector.load %arg13[%c0_15, %c0_16] : memref<1x32xf32, #tpu.memory_space<vmem>>, vector<1x32xf32>
      %25 = vector.shape_cast %24 : vector<1x32xf32> to vector<32xf32>
      %26 = vector.shape_cast %25 : vector<32xf32> to vector<1x32xf32>
      %27 = vector.broadcast %26 : vector<1x32xf32> to vector<8x32xf32>
      %28 = arith.addf %23, %27 : vector<8x32xf32>
      %29 = arith.addf %1, %28 : vector<8x32xf32>
      %c0_17 = arith.constant 0 : index
      %c0_18 = arith.constant 0 : index
      %30 = vector.load %arg14[%c0_17, %c0_18] : memref<1x32xf32, #tpu.memory_space<vmem>>, vector<1x32xf32>
      %31 = vector.shape_cast %30 : vector<1x32xf32> to vector<32xf32>
      %c0_19 = arith.constant 0 : index
      %c0_20 = arith.constant 0 : index
      %32 = vector.load %arg15[%c0_19, %c0_20] : memref<1x32xf32, #tpu.memory_space<vmem>>, vector<1x32xf32>
      %33 = vector.shape_cast %32 : vector<1x32xf32> to vector<32xf32>
      %cst_21 = arith.constant dense<0.000000e+00> : vector<8xf32>
      %34 = vector.multi_reduction <add>, %29, %cst_21 [1] : vector<8x32xf32> to vector<8xf32>
      %35 = vector.shape_cast %34 : vector<8xf32> to vector<8x1xf32>
      %cst_22 = arith.constant 3.200000e+01 : f32
      %36 = vector.broadcast %cst_22 : f32 to vector<8x1xf32>
      %37 = arith.divf %35, %36 : vector<8x1xf32>
      %38 = vector.broadcast %37 : vector<8x1xf32> to vector<8x32xf32>
      %39 = arith.subf %29, %38 : vector<8x32xf32>
      %40 = arith.mulf %39, %39 : vector<8x32xf32>
      %cst_23 = arith.constant dense<0.000000e+00> : vector<8xf32>
      %41 = vector.multi_reduction <add>, %40, %cst_23 [1] : vector<8x32xf32> to vector<8xf32>
      %42 = vector.shape_cast %41 : vector<8xf32> to vector<8x1xf32>
      %cst_24 = arith.constant 3.200000e+01 : f32
      %43 = vector.broadcast %cst_24 : f32 to vector<8x1xf32>
      %44 = arith.divf %42, %43 : vector<8x1xf32>
      %45 = vector.broadcast %37 : vector<8x1xf32> to vector<8x32xf32>
      %46 = arith.subf %29, %45 : vector<8x32xf32>
      %cst_25 = arith.constant 9.99999974E-6 : f32
      %47 = vector.broadcast %cst_25 : f32 to vector<8x1xf32>
      %48 = arith.addf %44, %47 : vector<8x1xf32>
      %49 = math.rsqrt %48 : vector<8x1xf32>
      %50 = vector.broadcast %49 : vector<8x1xf32> to vector<8x32xf32>
      %51 = arith.mulf %46, %50 : vector<8x32xf32>
      %52 = vector.shape_cast %31 : vector<32xf32> to vector<1x32xf32>
      %53 = vector.broadcast %52 : vector<1x32xf32> to vector<8x32xf32>
      %54 = arith.mulf %51, %53 : vector<8x32xf32>
      %55 = vector.shape_cast %33 : vector<32xf32> to vector<1x32xf32>
      %56 = vector.broadcast %55 : vector<1x32xf32> to vector<8x32xf32>
      %57 = arith.addf %54, %56 : vector<8x32xf32>
      %58 = arith.truncf %57 : vector<8x32xf32> to vector<8x32xbf16>
      %c0_26 = arith.constant 0 : index
      %c0_27 = arith.constant 0 : index
      %59 = vector.load %arg16[%c0_26, %c0_27] : memref<32x128xbf16, #tpu.memory_space<vmem>>, vector<32x128xbf16>
      %cst_28 = arith.constant dense<0.000000e+00> : vector<8x128xf32>
      %60 = tpu.matmul %58, %59, %cst_28 {dimension_numbers = #tpu.dot_dimension_numbers<[1], [0], [0], [1], [0, 0, 1, 1], [], []>} : vector<8x32xbf16>, vector<32x128xbf16>, vector<8x128xf32> -> vector<8x128xf32>
      %c0_29 = arith.constant 0 : index
      %c0_30 = arith.constant 0 : index
      %61 = vector.load %arg17[%c0_29, %c0_30] : memref<1x128xf32, #tpu.memory_space<vmem>>, vector<1x128xf32>
      %62 = vector.shape_cast %61 : vector<1x128xf32> to vector<128xf32>
      %63 = vector.shape_cast %62 : vector<128xf32> to vector<1x128xf32>
      %64 = vector.broadcast %63 : vector<1x128xf32> to vector<8x128xf32>
      %65 = arith.addf %60, %64 : vector<8x128xf32>
      %cst_31 = arith.constant 5.000000e-01 : f32
      %66 = vector.broadcast %cst_31 : f32 to vector<8x128xf32>
      %67 = arith.mulf %66, %65 : vector<8x128xf32>
      %cst_32 = arith.constant 4.471500e-02 : f32
      %68 = vector.broadcast %cst_32 : f32 to vector<8x128xf32>
      %69 = arith.mulf %68, %65 : vector<8x128xf32>
      %70 = arith.mulf %69, %65 : vector<8x128xf32>
      %71 = arith.mulf %70, %65 : vector<8x128xf32>
      %72 = arith.addf %65, %71 : vector<8x128xf32>
      %cst_33 = arith.constant 0.797884583 : f32
      %73 = vector.broadcast %cst_33 : f32 to vector<8x128xf32>
      %74 = arith.mulf %73, %72 : vector<8x128xf32>
      %75 = math.tanh %74 : vector<8x128xf32>
      %cst_34 = arith.constant 1.000000e+00 : f32
      %76 = vector.broadcast %cst_34 : f32 to vector<8x128xf32>
      %77 = arith.addf %76, %75 : vector<8x128xf32>
      %78 = arith.mulf %67, %77 : vector<8x128xf32>
      %79 = arith.truncf %78 : vector<8x128xf32> to vector<8x128xbf16>
      %c0_35 = arith.constant 0 : index
      %c0_36 = arith.constant 0 : index
      %80 = vector.load %arg18[%c0_35, %c0_36] : memref<128x32xbf16, #tpu.memory_space<vmem>>, vector<128x32xbf16>
      %cst_37 = arith.constant dense<0.000000e+00> : vector<8x32xf32>
      %81 = tpu.matmul %79, %80, %cst_37 {dimension_numbers = #tpu.dot_dimension_numbers<[1], [0], [0], [1], [0, 0, 1, 1], [], []>} : vector<8x128xbf16>, vector<128x32xbf16>, vector<8x32xf32> -> vector<8x32xf32>
      %c0_38 = arith.constant 0 : index
      %c0_39 = arith.constant 0 : index
      %82 = vector.load %arg19[%c0_38, %c0_39] : memref<1x32xf32, #tpu.memory_space<vmem>>, vector<1x32xf32>
      %83 = vector.shape_cast %82 : vector<1x32xf32> to vector<32xf32>
      %84 = vector.shape_cast %83 : vector<32xf32> to vector<1x32xf32>
      %85 = vector.broadcast %84 : vector<1x32xf32> to vector<8x32xf32>
      %86 = arith.addf %81, %85 : vector<8x32xf32>
      %87 = arith.addf %29, %86 : vector<8x32xf32>
      %c0_40 = arith.constant 0 : index
      %c0_41 = arith.constant 0 : index
      %c0_42 = arith.constant 0 : index
      %88 = vector.load %arg20[%c0_40, %c0_41, %c0_42] : memref<1x8x32xf32, #tpu.memory_space<vmem>>, vector<1x8x32xf32>
      %89 = vector.shape_cast %88 : vector<1x8x32xf32> to vector<8x32xf32>
      %90 = vector.shape_cast %87 : vector<8x32xf32> to vector<1x8x32xf32>
      tpu.vector_store %arg20[%c0_40, %c0_41, %c0_42], %90 {strides = array<i32>} : memref<1x8x32xf32, #tpu.memory_space<vmem>>, vector<1x8x32xf32>,
    } else {
    }
    return
  }
  func.func @transform_0(%arg0: i32, %arg1: i32, %arg2: i32) -> (i32, i32, i32) {
    %c0_i32 = arith.constant 0 : i32
    %c0_i32_0 = arith.constant 0 : i32
    return %arg0, %arg1, %c0_i32 : i32, i32, i32
  }
  func.func @transform_1(%arg0: i32, %arg1: i32, %arg2: i32) -> (i32, i32) {
    %c0_i32 = arith.constant 0 : i32
    %c0_i32_0 = arith.constant 0 : i32
    %c0_i32_1 = arith.constant 0 : i32
    return %c0_i32, %c0_i32_0 : i32, i32
  }
  func.func @transform_2(%arg0: i32, %arg1: i32, %arg2: i32) -> (i32, i32) {
    %c0_i32 = arith.constant 0 : i32
    %c0_i32_0 = arith.constant 0 : i32
    %c0_i32_1 = arith.constant 0 : i32
    return %c0_i32, %c0_i32_0 : i32, i32
  }
  func.func @transform_3(%arg0: i32, %arg1: i32, %arg2: i32) -> (i32, i32) {
    %c0_i32 = arith.constant 0 : i32
    %c0_i32_0 = arith.constant 0 : i32
    %c0_i32_1 = arith.constant 0 : i32
    return %c0_i32, %c0_i32_0 : i32, i32
  }
  func.func @transform_4(%arg0: i32, %arg1: i32, %arg2: i32) -> (i32, i32) {
    %c0_i32 = arith.constant 0 : i32
    %c0_i32_0 = arith.constant 0 : i32
    %c0_i32_1 = arith.constant 0 : i32
    return %c0_i32, %c0_i32_0 : i32, i32
  }
  func.func @transform_5(%arg0: i32, %arg1: i32, %arg2: i32) -> (i32, i32) {
    %c0_i32 = arith.constant 0 : i32
    %c0_i32_0 = arith.constant 0 : i32
    %c0_i32_1 = arith.constant 0 : i32
    return %c0_i32, %c0_i32_0 : i32, i32
  }
  func.func @transform_6(%arg0: i32, %arg1: i32, %arg2: i32) -> (i32, i32) {
    %c0_i32 = arith.constant 0 : i32
    %c0_i32_0 = arith.constant 0 : i32
    %c0_i32_1 = arith.constant 0 : i32
    return %c0_i32, %c0_i32_0 : i32, i32
  }
  func.func @transform_7(%arg0: i32, %arg1: i32, %arg2: i32) -> (i32, i32) {
    %c0_i32 = arith.constant 0 : i32
    %c0_i32_0 = arith.constant 0 : i32
    %c0_i32_1 = arith.constant 0 : i32
    return %c0_i32, %c0_i32_0 : i32, i32
  }
  func.func @transform_8(%arg0: i32, %arg1: i32, %arg2: i32) -> (i32, i32) {
    %c0_i32 = arith.constant 0 : i32
    %c0_i32_0 = arith.constant 0 : i32
    %c0_i32_1 = arith.constant 0 : i32
    return %c0_i32, %c0_i32_0 : i32, i32
  }
  func.func @transform_9(%arg0: i32, %arg1: i32, %arg2: i32) -> (i32, i32) {
    %c0_i32 = arith.constant 0 : i32
    %c0_i32_0 = arith.constant 0 : i32
    %c0_i32_1 = arith.constant 0 : i32
    return %c0_i32, %c0_i32_0 : i32, i32
  }
  func.func @transform_10(%arg0: i32, %arg1: i32, %arg2: i32) -> (i32, i32) {
    %c0_i32 = arith.constant 0 : i32
    %c0_i32_0 = arith.constant 0 : i32
    %c0_i32_1 = arith.constant 0 : i32
    return %c0_i32, %c0_i32_0 : i32, i32
  }
  func.func @transform_11(%arg0: i32, %arg1: i32, %arg2: i32) -> (i32, i32) {
    %c0_i32 = arith.constant 0 : i32
    %c0_i32_0 = arith.constant 0 : i32
    %c0_i32_1 = arith.constant 0 : i32
    return %c0_i32, %c0_i32_0 : i32, i32
  }
  func.func @transform_12(%arg0: i32, %arg1: i32, %arg2: i32) -> (i32, i32) {
    %c0_i32 = arith.constant 0 : i32
    %c0_i32_0 = arith.constant 0 : i32
    %c0_i32_1 = arith.constant 0 : i32
    return %c0_i32, %c0_i32_0 : i32, i32
  }
  func.func @transform_13(%arg0: i32, %arg1: i32, %arg2: i32) -> (i32, i32) {
    %c0_i32 = arith.constant 0 : i32
    %c0_i32_0 = arith.constant 0 : i32
    %c0_i32_1 = arith.constant 0 : i32
    return %c0_i32, %c0_i32_0 : i32, i32
  }
  func.func @transform_14(%arg0: i32, %arg1: i32, %arg2: i32) -> (i32, i32) {
    %c0_i32 = arith.constant 0 : i32
    %c0_i32_0 = arith.constant 0 : i32
    %c0_i32_1 = arith.constant 0 : i32
    return %c0_i32, %c0_i32_0 : i32, i32
  }
  func.func @transform_15(%arg0: i32, %arg1: i32, %arg2: i32) -> (i32, i32) {
    %c0_i32 = arith.constant 0 : i32
    %c0_i32_0 = arith.constant 0 : i32
    %c0_i32_1 = arith.constant 0 : i32
    return %c0_i32, %c0_i32_0 : i32, i32
  }
  func.func @transform_16(%arg0: i32, %arg1: i32, %arg2: i32) -> (i32, i32) {
    %c0_i32 = arith.constant 0 : i32
    %c0_i32_0 = arith.constant 0 : i32
    %c0_i32_1 = arith.constant 0 : i32
    return %c0_i32, %c0_i32_0 : i32, i32
  }
  func.func @transform_17(%arg0: i32, %arg1: i32, %arg2: i32) -> (i32, i32, i32) {
    %c0_i32 = arith.constant 0 : i32
    %c0_i32_0 = arith.constant 0 : i32
    return %arg0, %arg1, %c0_i32 : i32, i32, i32
  }
}

</mosaic_0001>

<bundles_post_ra>
// kernel: tpu_custom_call.1
= control target key start
LH: loop header
LB: loop body
LE: loop exit
PB: predicated region body
PF: predicated region fallthrough
CT: control target
= control target key end

     0   :  { %s3084_s0 = inlined_call_operand.vmem [shape: f32[2,8,32], index: 0, kind: input, shape index: {}]   ;;  %s3085_s1 = inlined_call_operand.hbm [shape: f32[1,32], index: 1, kind: input, shape index: {}]   ;;  %s3086_s2 = inlined_call_operand.vmem [shape: f32[1,32], index: 2, kind: input, shape index: {}]   ;;  %s3087_s3 = inlined_call_operand.vmem [shape: bf16[32,32], index: 3, kind: input, shape index: {}]   ;;  %s3088_s4 = inlined_call_operand.vmem [shape: f32[1,32], index: 4, kind: input, shape index: {}]   ;;  %s3089_s5 = inlined_call_operand.vmem [shape: bf16[32,32], index: 5, kind: input, shape index: {}]   ;;  %s3090_s6 = inlined_call_operand.vmem [shape: f32[1,32], index: 6, kind: input, shape index: {}]   ;;  %s3091_s7 = inlined_call_operand.vmem [shape: bf16[32,32], index: 7, kind: input, shape index: {}]   ;;  %s3092_s8 = inlined_call_operand.vmem [shape: f32[1,32], index: 8, kind: input, shape index: {}]   ;;  %s3093_s9 = inlined_call_operand.vmem [shape: bf16[32,32], index: 9, kind: input, shape index: {}]   ;;  %s3094_s10 = inlined_call_operand.vmem [shape: f32[1,32], index: 10, kind: input, shape index: {}]   ;;  %s3095_s11 = inlined_call_operand.vmem [shape: f32[1,32], index: 11, kind: input, shape index: {}]   ;;  %s3096_s12 = inlined_call_operand.vmem [shape: f32[1,32], index: 12, kind: input, shape index: {}]   ;;  %s3097_s13 = inlined_call_operand.hbm [shape: bf16[32,128], index: 13, kind: input, shape index: {}]   ;;  %s3098_s14 = inlined_call_operand.vmem [shape: f32[1,128], index: 14, kind: input, shape index: {}]   ;;  %s3099_s15 = inlined_call_operand.vmem [shape: bf16[128,32], index: 15, kind: input, shape index: {}]   ;;  %s3100_s16 = inlined_call_operand.vmem [shape: f32[1,32], index: 16, kind: input, shape index: {}]   ;;  %s3101_s17 = inlined_call_operand.hbm [shape: f32[2,8,32], index: 17, kind: output, shape index: {}]  }
   0x1   :  { %3111 = sst [smem:[#allocation26_spill]] %s3084_s0 }
   0x2   :  { %3112 = sst [smem:[#allocation27_spill]] %s3085_s1 }
   0x3   :  { %3113 = sst [smem:[#allocation28_spill]] %s3086_s2 }
   0x4   :  { %22 = vsyncpa [#allocation10], 0 }
   0x5   :  { %23 = vsyncpa [#allocation13], 0 }
   0x6   :  { %24 = vsyncpa [#allocation11], 0 }
   0x7   :  { %26 = vsyncpa [#allocation11 + $0x1], 0  ;;  %s2561_s24 = smov 0   ;;  %s2563_s25 = smov 0  }
   0x8   :  { %s2565_s26 = smov 0   ;;  %s2567_s27 = smov 0  }
   0x9   :  { %s2569_s28 = smov 0   ;;  %s2571_s29 = smov 0  }
   0xa LB: > { %3114 = sst [smem:[#allocation18_spill]] %s2433_s24  ;;  %s2053_s0 = sadd.s32 4294967295, %s2453_s29   ;;  %s2453_s29 = sphi %s2571_s29, %s32_s29   ;;  %s2449_s28 = sphi %s2569_s28, %s3136_s28   ;;  %s2445_s27 = sphi %s2567_s27, %s3135_s27   ;;  %s2441_s26 = sphi %s2565_s26, %s3134_s26   ;;  %s2437_s25 = sphi %s2563_s25, %s3138_s25   ;;  %s2433_s24 = sphi %s2561_s24, %s3137_s24  }
   0xb   : > { %3115 = sst [smem:[#allocation19_spill]] %s2441_s26  ;;  %s2054_s30 = sadd.s32 4294967294, %s2453_s29  }
   0xc   : > { %3116 = sst [smem:[#allocation20_spill]] %s2449_s28  ;;  %s51_s18 = sadd.s32 1, %s2449_s28 }
   0xd   : > { %3117 = sst [smem:[#allocation21_spill]] %s2453_s29  ;;  %s424_s19 = sadd.s32 1, %s2441_s26 }
   0xe   : > { %p53_p0 = scmp.ge.s32.totalorder %s51_s18, 2  ;;  %p434_p1 = scmp.ne.s32.totalorder %s2441_s26, %s2437_s25 }
   0xf   : > { %p435_p2 = scmp.eq.s32.totalorder %s2053_s0, 1  ;;  %p440_p3 = scmp.ne.s32.totalorder %s2437_s25, %s2433_s24 }
  0x10   : > { %s3140_s18 = smov (%p53_p0, %s51_s18), 0  ;;  %p441_p5 = scmp.eq.s32.totalorder %s2054_s30, 1 }
  0x11   : > { %3118 = sst [smem:[#allocation22_spill]] %s3140_s18  ;;  %p2601_p4 = por %p435_p2, %p434_p1 }
  0x12   : > { %s419_s20 = ssub.s32 %s2449_s28, %s3140_s18  ;;  %p2055_p6 = scmp.ge.s32.totalorder %s2453_s29, 1 }
  0x13   : > { %s3119_s1 = scalar_select %p2601_p4, 1, 0 }
  0x14   : > { %p422_p7 = scmp.eq.s32.totalorder %s419_s20, 0  ;;  %p2608_p8 = por %p441_p5, %p440_p3 }
  0x15   : > { %3120 = sst [smem:[#allocation23_spill]] %s3119_s1  ;;  %p448_p9 = scmp.lt.s32.totalorder %s2453_s29, 3 }
  0x16   : > { %s3121_s21 = scalar_select %p2608_p8, 1, 0 }
  0x17   : > { %s2614_s22 = scalar_select %p422_p7, %s2441_s26, %s424_s19  }
  0x18   : > { %3122 = sst [smem:[#allocation24_spill]] %s3121_s21  ;;  %p2616_p10 = pnand %p2055_p6, %p448_p9 }
  0x19   : > { %3123 = sst [smem:[#allocation25_spill]] %s2614_s22  ;;  %p2620_p11 = scmp.eq.s32.totalorder %s2053_s0, 0 }
  0x1a   : > { %s3126_s28 = sld [smem:[#allocation27_spill]]  ;;  %p2181_p12 = pneg %p2616_p10 }
  0x1b   : > { %s2455_s21 = smov [#allocation9]   ;;  %s504_s29 = sshll.u32 %s3097_s13, 4  ;;  %s505_s29 = int_to_ptr.hbm [resolvable:$true] %s504_s29 }
  0x1c   : > { %s462_s19 = sshll.u32 %s2455_s21, 4  ;;  %p2182_p13 = pnand %p2620_p11, %p2181_p12  ;;  %s463_s19 = int_to_ptr.vmem [resolvable:$true] %s462_s19 }
  0x1d   : > { %s2456_s0 = smov [#allocation12]   ;;  %s2457_s18 = smov 64  }
  0x1e   : > { %s506_s1 = sshll.u32 %s2456_s0, 4  ;;  %s2458_s30 = smov 4   ;;  %s507_s1 = int_to_ptr.vmem [resolvable:$true] %s506_s1 }
  0x1f   : > { %2187 = dma.hbm_to_vmem [thread:$0]  (!%p2182_p13), %s505_s29, 256, %s507_s1, [#allocation13], %s2457_s18, %s2457_s18, %s2458_s30  }
  0x20   : > { %s460_s20 = sshll.u32 %s3126_s28, 4  ;;  %541 = sbr.rel (%p2616_p10) target bundleno = 2096 (0x830), region = 88  ;;  %s461_s20 = int_to_ptr.hbm [resolvable:$true] %s460_s20 }
  0x21   : > { %2184 = dma.hbm_to_vmem [thread:$0]  (!%p2182_p13), %s461_s20, 16, %s463_s19, [#allocation10]  }
  0x25   : > { %2420 = dma.done.wait (%p2620_p11), [#allocation10], 16  }
  0x26   : > { %2422 = vsyncadd (%p2620_p11), [#allocation10], 4294967280 }
  0x27   : > { %2424 = dma.done.wait (%p2620_p11), [#allocation13], 256  }
  0x28   : > { %2426 = vsyncadd (%p2620_p11), [#allocation13], 4294967040  ;;  %p601_p0 = scmp.lt.s32.totalorder %s2445_s27, 1  ;;  %s3127_s21 = sld [smem:[#allocation26_spill]]  ;;  %vm616_vm0 = vcmask 261120   ;;  %v2459_v2 = vmov 32.0  }
  0x29   : > { %2274 = vrcp.f32 %v2459_v2  ;;  %v2154_v14 = vld [vmem:[%s3087_s3 + $0x8] sm:$0xff]  ;;  %v2153_v15 = vld [vmem:[%s3087_s3] sm:$0xff]  ;;  %v2264_v29 = vld [vmem:[#allocation9] ss:$0 sm:$0xff]  ;;  %s3128_s2 = sld [smem:[#allocation28_spill]]  ;;  %vm655_vm5 = vcmask 257024  }
  0x2a   : > { %s602_s26 = scalar_select %p601_p0, %s2445_s27, 1  ;;  %686 = vmatpush.bf16.msra.mxu0 %v2154_v14  ;;  %v2156_v16 = vld [vmem:[%s3089_s5 + $0x8] sm:$0xff]  ;;  %v2155_v18 = vld [vmem:[%s3089_s5] sm:$0xff]  ;;  %v2463_v51 = vmov 1983009808   ;;  %vm705_vm6 = vcmask 1047556  }
  0x2b   : > { %873 = vmatpush.bf16.msra.mxu2 %v2156_v16  ;;  %v2158_v21 = vld [vmem:[%s3091_s7 + $0x8] sm:$0xff]  ;;  %v2157_v22 = vld [vmem:[%s3091_s7] sm:$0xff]  ;;  %s2460_s0 = smov 112   ;;  %v710_v52 = vunpack.c.l.s4 %v2463_v51  ;;  %v2464_v60 = vmov 1934713408   ;;  %vm819_vm7 = vcmask 60416  }
  0x2c   : > { %s2063_s28 = sshll.u32 %s602_s26, 3  ;;  %v2266_v37 = vld [vmem:[%s3088_s4] ss:$0 sm:$0xff]  ;;  %s2461_s26 = smov 104   ;;  %v734_v61 = vunpack.c.l.s4 %v2464_v60  ;;  %vm833_vm8 = vcmask 64512   ;;  %vm824_vm9 = vcmask 7168  }
  0x2d   : > { %v2267_v42 = vld [vmem:[%s3090_s6] ss:$0 sm:$0xff]  ;;  %v2698_v57 = vunpack.c.0.s8 %v710_v52  ;;  %vm1418_vm11 = vcmask 1043456   ;;  %s2469_s24 = smov 16   ;;  %s2470_s23 = smov 8  }
  0x2e   : > { %s2649_s22 = scalar_lea.vmem %s3127_s21, %s2063_s28  ;;  %687 = vmatpush.bf16.msra.mxu0 %v2153_v15  ;;  %s2462_s28 = smov 120   ;;  %v2268_v46 = vld [vmem:[%s3092_s8] ss:$0 sm:$0xff] }
  0x2f   : > { %v609_v0 = vld [vmem:[%s2649_s22] sm:$0xff]  ;;  %v2275_v3 = vpop.eup %2274  ;;  %874 = vmatpush.bf16.msra.mxu2 %v2155_v18  ;;  %s2468_s21 = smov 24   ;;  %s2150_s30 = sshll.u32 %s2445_s27, 3 }
  0x30   : > { %v617_v1 = vsel %vm616_vm0, %v609_v0, 0.0  ;;  %v621_v4 = vmul.f32 32.0, %v2275_v3  ;;  %vm625_vm1 = vweird.f32 %v2275_v3  ;;  %v2265_v32 = vld [vmem:[%s3128_s2] ss:$0 sm:$0xff] }
  0x31   : > { %618 = vadd.xlane.f32.xlu0 %v617_v1 }
  0x32   : > { %v622_v5 = vsub.f32 1.0, %v621_v4  ;;  %v2703_v4 = vunpack.c.0.s8 %v734_v61 }
  0x33   : > { %906 = vmatpush.bf16.msrb.mxu2 %v2158_v21 }
  0x34   : > { %v623_v6 = vmul.f32 %v2275_v3, %v622_v5 }
  0x36   : > { %v624_v7 = vadd.f32 %v2275_v3, %v623_v6 }
  0x37   : > { %907 = vmatpush.bf16.msrb.mxu2 %v2157_v22 }
  0x38   : > { %v2653_v8 = vsel %vm625_vm1, %v2275_v3, %v624_v7 }
  0xa4   : > { %v619_v9 = vpop.xlane.xlu0 %618 }
  0xa5   : > { %v627_v10 = vmul.f32 %v2653_v8, %v619_v9 }
  0xa7   : > { %v628_v11 = vsub.f32 %v609_v0, %v627_v10 }
  0xa9   : > { %v629_v12 = vmul.f32 %v628_v11, %v628_v11 }
  0xab   : > { %v630_v13 = vsel %vm616_vm0, %v629_v12, 0.0 }
  0xac   : > { %631 = vadd.xlane.f32.xlu0 %v630_v13 }
 0x11f   : > { %v632_v17 = vpop.xlane.xlu0 %631 }
 0x120   : > { %v633_v19 = vmul.f32 %v632_v17, %v2653_v8 }
 0x122   : > { %v634_v20 = vadd.f32 1e-05, %v633_v19 }
 0x124   : > { %2276 = vrsqrt.f32 %v634_v20  ;;  %vm641_vm3 = vweird.f32 %v634_v20 }
 0x12a   : > { %v2277_v23 = vpop.eup %2276 }
 0x12b   : > { %v636_v24 = vmul.f32 %v2277_v23, %v634_v20  ;;  %vm642_vm2 = vweird.f32 %v2277_v23 }
 0x12c   : > { %vm643_vm4 = vmor %vm641_vm3, %vm642_vm2 }
 0x12d   : > { %v637_v25 = vmul.f32 %v2277_v23, %v636_v24 }
 0x12f   : > { %v638_v26 = vmul.f32 0.5, %v637_v25 }
 0x131   : > { %v639_v27 = vsub.f32 1.5, %v638_v26 }
 0x133   : > { %v640_v28 = vmul.f32 %v2277_v23, %v639_v27 }
 0x135   : > { %v644_v30 = vsel %vm643_vm4, %v2277_v23, %v640_v28 }
 0x136   : > { %v645_v31 = vmul.f32 %v644_v30, %v628_v11 }
 0x138   : > { %v649_v33 = vmul.f32 %v2264_v29, %v645_v31 }
 0x13a   : > { %v653_v34 = vadd.f32 %v2265_v32, %v649_v33 }
 0x13c   : > { %v654_v35 = vpack.c.bf16 %v653_v34, %v653_v34 }
 0x13e   : > { %656 = vst.msk [vmem:[#allocation2] sm:$0xf] %vm655_vm5, %v654_v35  ;;  %2072 = vmatmul.msk.bf16.vlgmr.msra.gmra.mxu0 %vm616_vm0, %v654_v35 }
 0x145   : > { %v842_v36 = vld [vmem:[#allocation2] sm:$0xf] }
 0x146   : > { %2081 = vmatmul.msk.bf16.vlgmr.msra.gmra.mxu2 %vm616_vm0, %v842_v36 }
 0x156   : > { %2090 = vmatmul.msk.bf16.vlgmr.msrb.gmra.mxu2 %vm616_vm0, %v842_v36 }
 0x1bb   : > { %v689_v38 = vpop.f32.mrf.mxu0 }
 0x1bc   : > { %v690_v39 = vadd.f32 %v2266_v37, %v689_v38 }
 0x1be   : > { %v693_v40 = vmul.f32 0.35355338, %v690_v39 }
 0x1c0   : > { %698 = vrot.lane.b32.xlu0 %v693_v40, %s2460_s0  ;;  %v707_v1 = vrot.slane %v693_v40, 4 }
 0x1c3   : > { %v691_v41 = vpop.f32.mrf.mxu0 }
 0x1c9   : > { %v876_v43 = vpop.f32.mrf.mxu2 }
 0x1ca   : > { %v877_v44 = vadd.f32 %v2267_v42, %v876_v43 }
 0x1cc   : > { %920 = vrot.lane.b32.xlu2 %v877_v44, %s2461_s26  ;;  %914 = vrot.lane.b32.xlu1 %v877_v44, %s2462_s28  ;;  %v926_v0 = vrot.slane %v877_v44, 4 }
 0x1d1   : > { %v878_v45 = vpop.f32.mrf.mxu2 }
 0x1d4   : > { %695 = vrot.lane.b32.xlu2 %v693_v40, %s2462_s28  ;;  %917 = vrot.lane.b32.xlu1 %v877_v44, %s2460_s0 }
 0x1d9   : > { %v909_v47 = vpop.f32.mrf.mxu2 }
 0x1da   : > { %v2692_v48 = vadd.f32 %v2268_v46, %v909_v47 }
 0x1dc   : > { %1047 = vrot.lane.b32.xlu2 %v2692_v48, %s2462_s28  ;;  %701 = vrot.lane.b32.xlu1 %v693_v40, %s2461_s26 }
 0x1e1   : > { %v911_v49 = vpop.f32.mrf.mxu2 }
 0x1e4   : > { %1050 = vrot.lane.b32.xlu1 %v2692_v48, %s2460_s0  ;;  %s598_s0 = sand.u32 1, %s2437_s25  }
 0x1e5   : > { %s2062_s18 = sshll.u32 %s598_s0, 3  ;;  %s1933_s27 = scalar_lea.sflag [#allocation11], %s598_s0 }
 0x226   : > { %v921_v50 = vpop.permute.xlu2 %920 }
 0x227   : > { %v936_v55 = vrot.slane %v921_v50, 4 }
 0x22e   : > { %v696_v17 = vpop.permute.xlu2 %695 }
 0x22f   : > { %v719_v27 = vrot.slane %v696_v17, 4 }
 0x232   : > { %v699_v58 = vpop.permute.xlu0 %698 }
 0x233   : > { %v704_v63 = vrot.slane %v699_v58, 4  ;;  %v708_v7 = vsel %vm705_vm6, %v699_v58, %v707_v1 }
 0x234   : > { %v716_v18 = vperm.slane %v708_v7, %v2698_v57 }
 0x235   : > { %v706_v11 = vsel %vm705_vm6, %v704_v63, %v693_v40 }
 0x236   : > { %v712_v20 = vperm.slane %v706_v11, %v2698_v57  ;;  %v743_v34 = vrot.slane %v716_v18, 4 }
 0x238   : > { %v731_v33 = vrot.slane %v712_v20, 4 }
 0x23e   : > { %v915_v53 = vpop.permute.xlu1 %914 }
 0x23f   : > { %v938_v54 = vrot.slane %v915_v53, 4  ;;  %v937_v59 = vsel %vm705_vm6, %v936_v55, %v915_v53 }
 0x240   : > { %v943_v2 = vperm.slane %v937_v59, %v2698_v57 }
 0x241   : > { %v939_v56 = vsel %vm705_vm6, %v921_v50, %v938_v54 }
 0x242   : > { %v947_v62 = vperm.slane %v939_v56, %v2698_v57  ;;  %v948_v13 = vrot.slane %v943_v2, 4 }
 0x244   : > { %v960_v9 = vrot.slane %v947_v62, 4 }
 0x246   : > { %v918_v3 = vpop.permute.xlu1 %917 }
 0x247   : > { %v923_v5 = vrot.slane %v918_v3, 4  ;;  %v927_v6 = vsel %vm705_vm6, %v918_v3, %v926_v0 }
 0x248   : > { %v935_v10 = vperm.slane %v927_v6, %v2698_v57 }
 0x249   : > { %v925_v12 = vsel %vm705_vm6, %v923_v5, %v877_v44 }
 0x24a   : > { %v931_v14 = vperm.slane %v925_v12, %v2698_v57  ;;  %v961_v15 = vsel %vm705_vm6, %v960_v9, %v935_v10  ;;  %v962_v16 = vrot.slane %v935_v10, 4 }
 0x24b   : > { %v967_v19 = vperm.slane %v961_v15, %v2703_v4 }
 0x24c   : > { %v949_v21 = vsel %vm705_vm6, %v948_v13, %v931_v14  ;;  %v950_v22 = vrot.slane %v931_v14, 4  ;;  %v963_v23 = vsel %vm705_vm6, %v947_v62, %v962_v16 }
 0x24d   : > { %v955_v24 = vperm.slane %v949_v21, %v2703_v4  ;;  %v971_v25 = vperm.slane %v963_v23, %v2703_v4  ;;  %v976_v26 = vrot.slane %v967_v19, 4 }
 0x24e   : > { %v951_v28 = vsel %vm705_vm6, %v943_v2, %v950_v22  ;;  %v702_v29 = vpop.permute.xlu1 %701 }
 0x24f   : > { %v959_v30 = vperm.slane %v951_v28, %v2703_v4  ;;  %v972_v31 = vrot.slane %v955_v24, 4  ;;  %v978_v32 = vrot.slane %v971_v25, 4  ;;  %v717_v35 = vrot.slane %v702_v29, 4 }
 0x250   : > { %v720_v36 = vsel %vm705_vm6, %v702_v29, %v719_v27  ;;  %v977_v38 = vsel %vm705_vm6, 0.0, %v976_v26 }
 0x251   : > { %v974_v37 = vrot.slane %v959_v30, 4  ;;  %v979_v39 = vsel %vm705_vm6, 0.0, %v978_v32  ;;  %v991_v40 = vsel %vm705_vm6, %v978_v32, %v967_v19  ;;  %v718_v43 = vsel %vm705_vm6, %v717_v35, %v696_v17 }
 0x252   : > { %v995_v41 = vperm.slane %v991_v40, %v2698_v57  ;;  %v996_v42 = vrot.slane %v979_v39, 4  ;;  %v728_v44 = vperm.slane %v720_v36, %v2698_v57  ;;  %v973_v45 = vsel %vm705_vm6, 0.0, %v972_v31 }
 0x253   : > { %v975_v46 = vsel %vm705_vm6, 0.0, %v974_v37  ;;  %v980_v47 = vsel %vm705_vm6, %v974_v37, %v955_v24  ;;  %v724_v49 = vperm.slane %v718_v43, %v2698_v57 }
 0x254   : > { %v984_v50 = vperm.slane %v980_v47, %v2698_v57  ;;  %v985_v51 = vrot.slane %v975_v46, 4  ;;  %v997_v52 = vsel %vm705_vm6, %v996_v42, %v977_v38  ;;  %v1016_v53 = vrot.slane %v995_v41, 4 }
 0x255   : > { %v1001_v54 = vperm.slane %v997_v52, %v2698_v57  ;;  %v729_v55 = vrot.slane %v724_v49, 4  ;;  %v732_v56 = vsel %vm705_vm6, %v724_v49, %v731_v33  ;;  %v741_v58 = vrot.slane %v728_v44, 4 }
 0x256   : > { %v986_v59 = vsel %vm705_vm6, %v985_v51, %v973_v45  ;;  %v1004_v60 = vrot.slane %v984_v50, 4  ;;  %v740_v61 = vperm.slane %v732_v56, %v2703_v4  ;;  %v744_v62 = vsel %vm705_vm6, %v728_v44, %v743_v34 }
 0x257   : > { %v990_v63 = vperm.slane %v986_v59, %v2698_v57  ;;  %v1014_v0 = vrot.slane %v1001_v54, 4  ;;  %v1017_v1 = vsel %vm705_vm6, %v1001_v54, %v1016_v53  ;;  %v730_v2 = vsel %vm705_vm6, %v729_v55, %v712_v20 }
 0x258   : > { %v1025_v3 = vperm.slane %v1017_v1, %v2703_v4  ;;  %v736_v5 = vperm.slane %v730_v2, %v2703_v4  ;;  %v742_v6 = vsel %vm705_vm6, %v741_v58, %v716_v18  ;;  %v752_v7 = vperm.slane %v744_v62, %v2703_v4 }
 0x259   : > { %v1002_v9 = vrot.slane %v990_v63, 4  ;;  %v1005_v10 = vsel %vm705_vm6, %v990_v63, %v1004_v60  ;;  %v1015_v11 = vsel %vm705_vm6, %v1014_v0, %v995_v41  ;;  %v748_v12 = vperm.slane %v742_v6, %v2703_v4 }
 0x25a   : > { %v1013_v13 = vperm.slane %v1005_v10, %v2703_v4  ;;  %v1021_v14 = vperm.slane %v1015_v11, %v2703_v4  ;;  %v1030_v15 = vrot.slane %v1025_v3, 4  ;;  %v753_v16 = vrot.slane %v736_v5, 4 }
 0x25b   : > { %v1003_v17 = vsel %vm705_vm6, %v1002_v9, %v984_v50  ;;  %v755_v19 = vrot.slane %v740_v61, 4  ;;  %v757_v20 = vrot.slane %v748_v12, 4  ;;  %v759_v18 = vrot.slane %v752_v7, 4 }
 0x25c   : > { %v1009_v21 = vperm.slane %v1003_v17, %v2703_v4  ;;  %v1026_v22 = vrot.slane %v1021_v14, 4  ;;  %v1031_v23 = vsel %vm705_vm6, %v1030_v15, %v1013_v13  ;;  %v1032_v24 = vrot.slane %v1013_v13, 4 }
 0x25d   : > { %v1036_v25 = vpack.c.bf16 %v1031_v23, %v1031_v23  ;;  %v754_v26 = vsel %vm705_vm6, 0.0, %v753_v16  ;;  %v756_v27 = vsel %vm705_vm6, 0.0, %v755_v19  ;;  %v758_v28 = vsel %vm705_vm6, 0.0, %v757_v20 }
 0x25e   : > { %v1027_v29 = vsel %vm705_vm6, %v1026_v22, %v1009_v21  ;;  %v1028_v30 = vrot.slane %v1009_v21, 4  ;;  %v1033_v31 = vsel %vm705_vm6, %v1025_v3, %v1032_v24  ;;  %v760_v32 = vsel %vm705_vm6, 0.0, %v759_v18 }
 0x25f   : > { %v1034_v33 = vpack.c.bf16 %v1027_v29, %v1027_v29  ;;  %v1037_v34 = vpack.c.bf16 %v1033_v31, %v1033_v31  ;;  %1044 = vst.msk [vmem:[#allocation4 + $0x8] sm:$0xf] %vm819_vm7, %v1036_v25  ;;  %v761_v35 = vsel %vm705_vm6, %v755_v19, %v736_v5  ;;  %v766_v36 = vrot.slane %v756_v27, 4 }
 0x260   : > { %v1029_v37 = vsel %vm705_vm6, %v1021_v14, %v1028_v30  ;;  %v765_v38 = vperm.slane %v761_v35, %v2698_v57  ;;  %v772_v39 = vsel %vm705_vm6, %v759_v18, %v748_v12  ;;  %v777_v40 = vrot.slane %v760_v32, 4 }
 0x261   : > { %v1035_v41 = vpack.c.bf16 %v1029_v37, %v1029_v37  ;;  %1042 = vst.msk [vmem:[#allocation4] sm:$0xf] %vm819_vm7, %v1034_v33  ;;  %v767_v42 = vsel %vm705_vm6, %v766_v36, %v754_v26  ;;  %v776_v43 = vperm.slane %v772_v39, %v2698_v57  ;;  %v1274_v23 = vlaneseq }
 0x262   : > { %1045 = vst.msk [vmem:[#allocation4 + $0xc] sm:$0xf] %vm819_vm7, %v1037_v34  ;;  %v771_v44 = vperm.slane %v767_v42, %v2698_v57  ;;  %v778_v45 = vsel %vm705_vm6, %v777_v40, %v758_v28  ;;  %v785_v46 = vrot.slane %v765_v38, 4  ;;  %v2465_v24 = vmov -1e+30  }
 0x263   : > { %1043 = vst.msk [vmem:[#allocation4 + $0x4] sm:$0xf] %vm819_vm7, %v1035_v41  ;;  %v782_v47 = vperm.slane %v778_v45, %v2698_v57  ;;  %v797_v49 = vrot.slane %v776_v43, 4  ;;  %v1275_v25 = vshrl.u32 %v1274_v23, 7  ;;  %v1277_v26 = vand.u32 127, %v1274_v23  ;;  %v1048_v45 = vpop.permute.xlu2 %1047 }
 0x264   : > { %v783_v50 = vrot.slane %v771_v44, 4  ;;  %v786_v51 = vsel %vm705_vm6, %v771_v44, %v785_v46  ;;  %827 = vst.msk [vmem:[#allocation6 + $0x10] sm:$0xff] %vm824_vm9, %v2465_v24  ;;  %v2467_v44 = vmov 0.0   ;;  %v1051_v46 = vpop.permute.xlu1 %1050 }
 0x265   : > { %v794_v52 = vperm.slane %v786_v51, %v2703_v4  ;;  %v795_v53 = vrot.slane %v782_v47, 4  ;;  %v798_v54 = vsel %vm705_vm6, %v782_v47, %v797_v49  ;;  %825 = vst.msk [vmem:[#allocation6] sm:$0xff] %vm824_vm9, %v2465_v24  ;;  %vm1278_vm10 = vcmp.le.s32.totalorder %v1277_v26, %v1275_v25 }
 0x266   : > { %v784_v55 = vsel %vm705_vm6, %v783_v50, %v765_v38  ;;  %v806_v56 = vperm.slane %v798_v54, %v2703_v4  ;;  %v1185_v58 = vld [vmem:[#allocation4 + $0x8] sm:$0xf]  ;;  %826 = vst.msk [vmem:[#allocation6 + $0x8] sm:$0xff] %vm824_vm9, %v2465_v24 }
 0x267   : > { %v790_v59 = vperm.slane %v784_v55, %v2703_v4  ;;  %v796_v60 = vsel %vm705_vm6, %v795_v53, %v776_v43  ;;  %v813_v61 = vrot.slane %v794_v52, 4  ;;  %v1240_v62 = vsel %vm833_vm8, %v1185_v58, 0  ;;  %828 = vst.msk [vmem:[#allocation6 + $0x18] sm:$0xff] %vm824_vm9, %v2465_v24 }
 0x268   : > { %v802_v63 = vperm.slane %v796_v60, %v2703_v4  ;;  %v811_v0 = vrot.slane %v806_v56, 4  ;;  %1249 = vmatpush.bf16.xpose.msra.mxu1 %v1240_v62  ;;  %v1183_v1 = vld [vmem:[#allocation4] sm:$0xf]  ;;  %v2466_v43 = vmov 0   ;;  %829 = vst.msk [vmem:[#allocation7] sm:$0xff] %vm824_vm9, %v2467_v44 }
 0x269   : > { %v809_v2 = vrot.slane %v790_v59, 4  ;;  %v814_v3 = vsel %vm705_vm6, %v806_v56, %v813_v61  ;;  %v1202_v5 = vsel %vm833_vm8, %v1183_v1, 0  ;;  %v1186_v6 = vld [vmem:[#allocation4 + $0xc] sm:$0xf]  ;;  %2263 = vset.pattern.permute.xlu0 %v2466_v43  ;;  %2262 = vset.pattern.permute.xlu1 %v2466_v43  ;;  %830 = vst.msk [vmem:[#allocation7 + $0x8] sm:$0xff] %vm824_vm9, %v2467_v44  ;;  %v1056_v1 = vrot.slane %v1051_v46, 4 }
 0x26a   : > { %v807_v7 = vrot.slane %v802_v63, 4  ;;  %v812_v9 = vsel %vm705_vm6, %v811_v0, %v794_v52  ;;  %v818_v10 = vpack.c.bf16 %v814_v3, %v814_v3  ;;  %1211 = vmatpush.bf16.xpose.msra.mxu3 %v1202_v5  ;;  %v1259_v11 = vsel %vm833_vm8, %v1186_v6, 0  ;;  %v1184_v12 = vld [vmem:[#allocation4 + $0x4] sm:$0xf]  ;;  %2261 = vset.pattern.permute.xlu2 %v2466_v43  ;;  %831 = vst.msk [vmem:[#allocation7 + $0x10] sm:$0xff] %vm824_vm9, %v2467_v44 }
 0x26b   : > { %v810_v13 = vsel %vm705_vm6, %v802_v63, %v809_v2  ;;  %v817_v14 = vpack.c.bf16 %v812_v9, %v812_v9  ;;  %1268 = vmatpush.bf16.xpose.msra.mxu2 %v1259_v11  ;;  %v1221_v15 = vsel %vm833_vm8, %v1184_v12, 0  ;;  %832 = vst.msk [vmem:[#allocation7 + $0x18] sm:$0xff] %vm824_vm9, %v2467_v44  ;;  %v2827_v47 = vld [vmem:[#allocation6 + $0x10] sm:$0xff]  ;;  %v1058_v0 = vrot.slane %v2692_v48, 4 }
 0x26c   : > { %v808_v16 = vsel %vm705_vm6, %v807_v7, %v790_v59  ;;  %v816_v17 = vpack.c.bf16 %v810_v13, %v810_v13  ;;  %823 = vst.msk [vmem:[#allocation3 + $0xc] sm:$0xf] %vm819_vm7, %v818_v10  ;;  %1230 = vmatpush.bf16.xpose.msrb.mxu0 %v1221_v15  ;;  %v2851_v60 = vld [vmem:[#allocation6] sm:$0xff]  ;;  %v1057_v5 = vsel %vm705_vm6, %v1056_v1, %v2692_v48  ;;  %v1070_v7 = vrot.slane %v1048_v45, 4 }
 0x26d   : > { %v815_v19 = vpack.c.bf16 %v808_v16, %v808_v16  ;;  %822 = vst.msk [vmem:[#allocation3 + $0x8] sm:$0xf] %vm819_vm7, %v817_v14  ;;  %v2829_v49 = vld [vmem:[#allocation6 + $0x8] sm:$0xff]  ;;  %v1059_v3 = vsel %vm705_vm6, %v1051_v46, %v1058_v0  ;;  %v1063_v9 = vperm.slane %v1057_v5, %v2698_v57 }
 0x26e   : > { %821 = vst.msk [vmem:[#allocation3 + $0x4] sm:$0xf] %vm819_vm7, %v816_v17  ;;  %v2841_v55 = vld [vmem:[#allocation6 + $0x18] sm:$0xff]  ;;  %v1067_v6 = vperm.slane %v1059_v3, %v2698_v57 }
 0x26f   : > { %820 = vst.msk [vmem:[#allocation3] sm:$0xf] %vm819_vm7, %v815_v19  ;;  %v1082_v16 = vrot.slane %v1063_v9, 4 }
 0x270   : > { %834 = vst.msk [vmem:[#allocation8] sm:$0xff] %vm833_vm8, %v2467_v44  ;;  %v1094_v13 = vrot.slane %v1067_v6, 4 }
 0x271   : > { %835 = vst.msk [vmem:[#allocation8 + $0x8] sm:$0xff] %vm833_vm8, %v2467_v44 }
 0x272   : > { %836 = vst.msk [vmem:[#allocation8 + $0x10] sm:$0xff] %vm833_vm8, %v2467_v44 }
 0x273   : > { %v1196_v20 = vld [vmem:[#allocation3 + $0xc] sm:$0xf]  ;;  %837 = vst.msk [vmem:[#allocation8 + $0x18] sm:$0xff] %vm833_vm8, %v2467_v44 }
 0x274   : > { %v1195_v18 = vld [vmem:[#allocation3 + $0x8] sm:$0xf]  ;;  %2094 = vmatmul.msk.bf16.vlgmr.msra.gmra.mxu2 %vm833_vm8, %v1196_v20 }
 0x275   : > { %2093 = vmatmul.msk.bf16.vlgmr.msra.gmra.mxu1 %vm833_vm8, %v1195_v18  ;;  %v1194_v21 = vld [vmem:[#allocation3 + $0x4] sm:$0xf] }
 0x276   : > { %v1193_v22 = vld [vmem:[#allocation3] sm:$0xf]  ;;  %2092 = vmatmul.msk.bf16.vlgmr.msrb.gmra.mxu0 %vm833_vm8, %v1194_v21 }
 0x277   : > { %2091 = vmatmul.msk.bf16.vlgmr.msra.gmra.mxu3 %vm833_vm8, %v1193_v22 }
 0x2f2   : > { %v1251_v27 = vpop.f32.mrf.mxu1 }
 0x2f3   : > { %v2801_v28 = vsel %vm1278_vm10, %v1251_v27, -1e+30  ;;  %v1232_v29 = vpop.f32.mrf.mxu0 }
 0x2f4   : > { %v1300_v30 = vsel %vm833_vm8, %v2801_v28, -inf  ;;  %v2805_v31 = vsel %vm1278_vm10, %v1232_v29, -1e+30 }
 0x2f5   : > { %1301 = vmax.xlane.f32.xlu0 %v1300_v30  ;;  %v1297_v32 = vsel %vm833_vm8, %v2805_v31, -inf }
 0x2f6   : > { %1298 = vmax.xlane.f32.xlu2 %v1297_v32 }
 0x2f7   : > { %v1270_v33 = vpop.f32.mrf.mxu2 }
 0x2f8   : > { %v2809_v34 = vsel %vm1278_vm10, %v1270_v33, -1e+30 }
 0x2f9   : > { %v1303_v35 = vsel %vm833_vm8, %v2809_v34, -inf }
 0x2fa   : > { %v1213_v36 = vpop.f32.mrf.mxu3  ;;  %v1253_v37 = vpop.f32.mrf.mxu1  ;;  %1304 = vmax.xlane.f32.xlu1 %v1303_v35 }
 0x2fb   : > { %v2813_v38 = vsel %vm1278_vm10, %v1213_v36, -1e+30  ;;  %v1234_v39 = vpop.f32.mrf.mxu0 }
 0x2fc   : > { %v1294_v40 = vsel %vm833_vm8, %v2813_v38, -inf }
 0x2fe   : > { %1295 = vmax.xlane.f32.xlu2 %v1294_v40 }
 0x2ff   : > { %v1272_v41 = vpop.f32.mrf.mxu2 }
 0x302   : > { %v1215_v42 = vpop.f32.mrf.mxu3 }
 0x309   : > { %1053 = vrot.lane.b32.xlu0 %v2692_v48, %s2461_s26 }
 0x368   : > { %v1302_v50 = vpop.xlane.xlu0 %1301 }
 0x369   : > { %v2832_v51 = vmax.f32 %v2827_v47, %v1302_v50  ;;  %v1299_v52 = vpop.xlane.xlu2 %1298 }
 0x36a   : > { %v2835_v53 = vmax.f32 %v2829_v49, %v1299_v52 }
 0x36b   : > { %v1312_v54 = vsub.f32 %v2827_v47, %v2832_v51  ;;  %1502 = vst.msk [vmem:[#allocation6 + $0x10] sm:$0xff] %vm824_vm9, %v2832_v51 }
 0x36c   : > { %v1311_v56 = vsub.f32 %v2829_v49, %v2835_v53  ;;  %1501 = vst.msk [vmem:[#allocation6 + $0x8] sm:$0xff] %vm824_vm9, %v2835_v53  ;;  %1329 = vperm.xlu0 %2263, %v2835_v53   ;;  %v1354_v53 = vld [vmem:[#allocation7] sm:$0xff] }
 0x36d   : > { %v1305_v58 = vpop.xlane.xlu1 %1304 }
 0x36e   : > { %v2849_v59 = vmax.f32 %v2841_v55, %v1305_v58 }
 0x370   : > { %v1313_v61 = vsub.f32 %v2841_v55, %v2849_v59  ;;  %1503 = vst.msk [vmem:[#allocation6 + $0x18] sm:$0xff] %vm824_vm9, %v2849_v59  ;;  %1339 = vperm.xlu1 %2262, %v2849_v59   ;;  %v1356_v55 = vld [vmem:[#allocation7 + $0x10] sm:$0xff] }
 0x371   : > { %v1296_v62 = vpop.xlane.xlu2 %1295 }
 0x372   : > { %v2859_v63 = vmax.f32 %v2851_v60, %v1296_v62 }
 0x374   : > { %v1310_v2 = vsub.f32 %v2851_v60, %v2859_v63  ;;  %1500 = vst.msk [vmem:[#allocation6] sm:$0xff] %vm824_vm9, %v2859_v63  ;;  %1324 = vperm.xlu2 %2261, %v2859_v63   ;;  %v1355_v63 = vld [vmem:[#allocation7 + $0x8] sm:$0xff] }
 0x37b   : > { %v1054_v10 = vpop.permute.xlu0 %1053 }
 0x37c   : > { %v1068_v11 = vrot.slane %v1054_v10, 4  ;;  %v1071_v12 = vsel %vm705_vm6, %v1054_v10, %v1070_v7  ;;  %1334 = vperm.xlu2 %2261, %v2832_v51   ;;  %v1320_v51 = vmul.f32 1.442695, %v1313_v61 }
 0x37d   : > { %v1079_v14 = vperm.slane %v1071_v12, %v2698_v57 }
 0x37e   : > { %v1069_v15 = vsel %vm705_vm6, %v1068_v11, %v1048_v45 }
 0x37f   : > { %v1075_v17 = vperm.slane %v1069_v15, %v2698_v57  ;;  %v1092_v48 = vrot.slane %v1079_v14, 4  ;;  %v1095_v19 = vsel %vm705_vm6, %v1079_v14, %v1094_v13 }
 0x380   : > { %v1103_v20 = vperm.slane %v1095_v19, %v2703_v4 }
 0x381   : > { %v1080_v18 = vrot.slane %v1075_v17, 4  ;;  %v1083_v21 = vsel %vm705_vm6, %v1075_v17, %v1082_v16  ;;  %v1093_v22 = vsel %vm705_vm6, %v1092_v48, %v1067_v6 }
 0x382   : > { %v1091_v23 = vperm.slane %v1083_v21, %v2703_v4  ;;  %v1099_v24 = vperm.slane %v1093_v22, %v2703_v4  ;;  %v1110_v25 = vrot.slane %v1103_v20, 4 }
 0x383   : > { %v1081_v26 = vsel %vm705_vm6, %v1080_v18, %v1063_v9 }
 0x384   : > { %v1087_v27 = vperm.slane %v1081_v26, %v2703_v4  ;;  %v1106_v29 = vrot.slane %v1091_v23, 4  ;;  %v1108_v30 = vrot.slane %v1099_v24, 4  ;;  %v1111_v32 = vsel %vm705_vm6, 0.0, %v1110_v25 }
 0x385   : > { %v1123_v33 = vsel %vm705_vm6, %v1110_v25, %v1099_v24  ;;  %v1128_v35 = vrot.slane %v1111_v32, 4 }
 0x386   : > { %v1104_v36 = vrot.slane %v1087_v27, 4  ;;  %v1107_v37 = vsel %vm705_vm6, 0.0, %v1106_v29  ;;  %v1109_v39 = vsel %vm705_vm6, 0.0, %v1108_v30  ;;  %v1112_v40 = vsel %vm705_vm6, %v1106_v29, %v1087_v27 }
 0x387   : > { %v1116_v41 = vperm.slane %v1112_v40, %v2698_v57  ;;  %v1117_v42 = vrot.slane %v1107_v37, 4  ;;  %v1127_v43 = vperm.slane %v1123_v33, %v2698_v57  ;;  %v1129_v44 = vsel %vm705_vm6, %v1128_v35, %v1109_v39 }
 0x388   : > { %v1105_v45 = vsel %vm705_vm6, 0.0, %v1104_v36  ;;  %v1133_v46 = vperm.slane %v1129_v44, %v2698_v57 }
 0x389   : > { %v1118_v50 = vsel %vm705_vm6, %v1117_v42, %v1105_v45  ;;  %v1136_v52 = vrot.slane %v1116_v41, 4  ;;  %v1148_v58 = vrot.slane %v1127_v43, 4 }
 0x38a   : > { %v1122_v62 = vperm.slane %v1118_v50, %v2698_v57  ;;  %v1146_v0 = vrot.slane %v1133_v46, 4 }
 0x38b   : > { %v1149_v1 = vsel %vm705_vm6, %v1133_v46, %v1148_v58 }
 0x38c   : > { %v1134_v3 = vrot.slane %v1122_v62, 4  ;;  %v1137_v5 = vsel %vm705_vm6, %v1122_v62, %v1136_v52  ;;  %v1147_v6 = vsel %vm705_vm6, %v1146_v0, %v1127_v43  ;;  %v1157_v7 = vperm.slane %v1149_v1, %v2703_v4 }
 0x38d   : > { %v1145_v9 = vperm.slane %v1137_v5, %v2703_v4  ;;  %v1153_v10 = vperm.slane %v1147_v6, %v2703_v4  ;;  %v1318_v1 = vmul.f32 1.442695, %v1312_v54  ;;  %v1314_v54 = vmul.f32 1.442695, %v1310_v2 }
 0x38e   : > { %v1135_v11 = vsel %vm705_vm6, %v1134_v3, %v1116_v41  ;;  %v1162_v12 = vrot.slane %v1157_v7, 4 }
 0x38f   : > { %v1141_v13 = vperm.slane %v1135_v11, %v2703_v4  ;;  %v1158_v14 = vrot.slane %v1153_v10, 4  ;;  %v1164_v15 = vrot.slane %v1145_v9, 4 }
 0x390   : > { %v1163_v16 = vsel %vm705_vm6, %v1162_v12, %v1145_v9  ;;  %v1316_v9 = vmul.f32 1.442695, %v1311_v56 }
 0x391   : > { %v1159_v17 = vsel %vm705_vm6, %v1158_v14, %v1141_v13  ;;  %v1160_v48 = vrot.slane %v1141_v13, 4  ;;  %v1165_v19 = vsel %vm705_vm6, %v1157_v7, %v1164_v15  ;;  %v1168_v20 = vpack.c.bf16 %v1163_v16, %v1163_v16  ;;  %v1385_v15 = vld [vmem:[#allocation8 + $0x10] sm:$0xff] }
 0x392   : > { %v1166_v18 = vpack.c.bf16 %v1159_v17, %v1159_v17  ;;  %v1169_v21 = vpack.c.bf16 %v1165_v19, %v1165_v19 }
 0x393   : > { %v1161_v22 = vsel %vm705_vm6, %v1153_v10, %v1160_v48  ;;  %1174 = vst.msk [vmem:[#allocation5 + $0x8] sm:$0xf] %vm819_vm7, %v1168_v20  ;;  %v1357_v48 = vld [vmem:[#allocation7 + $0x18] sm:$0xff] }
 0x394   : > { %v1167_v23 = vpack.c.bf16 %v1161_v22, %v1161_v22  ;;  %1172 = vst.msk [vmem:[#allocation5] sm:$0xf] %vm819_vm7, %v1166_v18 }
 0x395   : > { %1175 = vst.msk [vmem:[#allocation5 + $0xc] sm:$0xf] %vm819_vm7, %v1169_v21 }
 0x396   : > { %1173 = vst.msk [vmem:[#allocation5 + $0x4] sm:$0xf] %vm819_vm7, %v1167_v23 }
 0x39a   : > { %v1191_v24 = vld [vmem:[#allocation5 + $0x8] sm:$0xf] }
 0x39b   : > { %v1458_v25 = vsel %vm1418_vm11, %v1191_v24, 0  ;;  %v1189_v26 = vld [vmem:[#allocation5] sm:$0xf] }
 0x39c   : > { %1467 = vmatpush.bf16.msrb.mxu1 %v1458_v25  ;;  %v1420_v27 = vsel %vm1418_vm11, %v1189_v26, 0  ;;  %v1192_v29 = vld [vmem:[#allocation5 + $0xc] sm:$0xf] }
 0x39d   : > { %1429 = vmatpush.bf16.msrb.mxu3 %v1420_v27  ;;  %v1477_v30 = vsel %vm1418_vm11, %v1192_v29, 0  ;;  %v1190_v32 = vld [vmem:[#allocation5 + $0x4] sm:$0xf] }
 0x39e   : > { %1486 = vmatpush.bf16.msrb.mxu2 %v1477_v30  ;;  %v1439_v33 = vsel %vm1418_vm11, %v1190_v32, 0 }
 0x39f   : > { %1448 = vmatpush.bf16.msra.mxu0 %v1439_v33 }
 0x3ce   : > { %v1325_v35 = vpop.permute.xlu2 %1324 }
 0x3cf   : > { %v1342_v36 = vsub.f32 %v2813_v38, %v1325_v35 }
 0x3d1   : > { %v1346_v37 = vmul.f32 1.442695, %v1342_v36  ;;  %v1384_v36 = vld [vmem:[#allocation8 + $0x8] sm:$0xff] }
 0x3d3   : > { %2278 = vpow2.f32 %v1346_v37 }
 0x3d6   : > { %v1335_v39 = vpop.permute.xlu2 %1334 }
 0x3d7   : > { %v1344_v40 = vsub.f32 %v2801_v28, %v1335_v39 }
 0x3d9   : > { %v2279_v41 = vpop.eup %2278  ;;  %v1350_v42 = vmul.f32 1.442695, %v1344_v40 }
 0x3da   : > { %v1362_v43 = vsel %vm833_vm8, %v2279_v41, 0.0  ;;  %v1411_v44 = vpack.c.bf16 %v2279_v41, %v2279_v41 }
 0x3db   : > { %2280 = vpow2.f32 %v1350_v42  ;;  %1363 = vadd.xlane.f32.xlu2 %v1362_v43 }
 0x3dc   : > { %2095 = vmatmul.msk.bf16.vlgmr.msrb.gmra.mxu3 %vm833_vm8, %v1411_v44 }
 0x3de   : > { %v1330_v45 = vpop.permute.xlu0 %1329 }
 0x3df   : > { %v1343_v46 = vsub.f32 %v2805_v31, %v1330_v45 }
 0x3e1   : > { %v2281_v50 = vpop.eup %2280  ;;  %v1348_v52 = vmul.f32 1.442695, %v1343_v46 }
 0x3e2   : > { %v1340_v38 = vpop.permute.xlu1 %1339  ;;  %v1368_v58 = vsel %vm833_vm8, %v2281_v50, 0.0  ;;  %v1413_v62 = vpack.c.bf16 %v2281_v50, %v2281_v50 }
 0x3e3   : > { %2282 = vpow2.f32 %v1348_v52  ;;  %v1345_v28 = vsub.f32 %v2809_v34, %v1340_v38  ;;  %1369 = vadd.xlane.f32.xlu1 %v1368_v58 }
 0x3e4   : > { %2097 = vmatmul.msk.bf16.vlgmr.msrb.gmra.mxu1 %vm833_vm8, %v1413_v62 }
 0x3e5   : > { %v1352_v0 = vmul.f32 1.442695, %v1345_v28 }
 0x3e7   : > { %2284 = vpow2.f32 %v1352_v0 }
 0x3e8   : > { %2286 = vpow2.f32 %v1318_v1 }
 0x3e9   : > { %v2283_v3 = vpop.eup %2282  ;;  %2288 = vpow2.f32 %v1316_v9 }
 0x3ea   : > { %v1412_v31 = vpack.c.bf16 %v2283_v3, %v2283_v3  ;;  %v1365_v5 = vsel %vm833_vm8, %v2283_v3, 0.0  ;;  %2290 = vpow2.f32 %v1320_v51 }
 0x3eb   : > { %1366 = vadd.xlane.f32.xlu1 %v1365_v5  ;;  %2292 = vpow2.f32 %v1314_v54 }
 0x3ec   : > { %2096 = vmatmul.msk.bf16.vlgmr.msra.gmra.mxu0 %vm833_vm8, %v1412_v31 }
 0x3ed   : > { %v2285_v6 = vpop.eup %2284 }
 0x3ee   : > { %v1414_v7 = vpack.c.bf16 %v2285_v6, %v2285_v6  ;;  %v1371_v34 = vsel %vm833_vm8, %v2285_v6, 0.0  ;;  %v2287_v47 = vpop.eup %2286 }
 0x3ef   : > { %1372 = vadd.xlane.f32.xlu0 %v1371_v34  ;;  %v2289_v10 = vpop.eup %2288  ;;  %v1360_v59 = vmul.f32 %v2287_v47, %v1356_v55 }
 0x3f0   : > { %2098 = vmatmul.msk.bf16.vlgmr.msrb.gmra.mxu2 %vm833_vm8, %v1414_v7  ;;  %v2291_v11 = vpop.eup %2290  ;;  %v1359_v16 = vmul.f32 %v2289_v10, %v1355_v63 }
 0x3f1   : > { %v2293_v49 = vpop.eup %2292  ;;  %v1361_v25 = vmul.f32 %v2291_v11, %v1357_v48 }
 0x3f2   : > { %v1358_v56 = vmul.f32 %v2293_v49, %v1354_v53 }
 0x3f3   : > { %1399 = vperm.xlu2 %2261, %v2287_v47  }
 0x3fb   : > { %1394 = vperm.xlu2 %2261, %v2289_v10  }
 0x403   : > { %1404 = vperm.xlu0 %2263, %v2291_v11  }
 0x404   : > { %1389 = vperm.xlu1 %2262, %v2293_v49   ;;  %v1386_v49 = vld [vmem:[#allocation8 + $0x18] sm:$0xff] }
 0x44e   : > { %v1364_v12 = vpop.xlane.xlu2 %1363 }
 0x44f   : > { %v1374_v13 = vadd.f32 %v1364_v12, %v1358_v56  ;;  %v1383_v56 = vld [vmem:[#allocation8] sm:$0xff] }
 0x451   : > { %1379 = vst.msk [vmem:[#allocation7] sm:$0xff] %vm824_vm9, %v1374_v13 }
 0x456   : > { %v1370_v61 = vpop.xlane.xlu1 %1369  ;;  %v1400_v2 = vpop.permute.xlu2 %1399 }
 0x457   : > { %v1376_v14 = vadd.f32 %v1370_v61, %v1360_v59  ;;  %v1409_v21 = vmul.f32 %v1400_v2, %v1385_v15 }
 0x458   : > { %v1511_v60 = vld [vmem:[#allocation7] sm:$0xff] }
 0x459   : > { %1381 = vst.msk [vmem:[#allocation7 + $0x10] sm:$0xff] %vm824_vm9, %v1376_v14  ;;  %2294 = vrcp.f32 %v1511_v60  ;;  %v1526_v32 = vand.u32 2147483648, %v1511_v60  ;;  %v1524_v35 = vand.u32 2147483647, %v1511_v60  ;;  %vm1520_vm13 = vweird.f32 %v1511_v60 }
 0x45b   : > { %v1527_v42 = vor.u32 1.1754944e-38, %v1526_v32  ;;  %vm1525_vm15 = vcmp.eq.f32.partialorder %v1524_v35, 8.507059e+37 }
 0x45e   : > { %v1367_v17 = vpop.xlane.xlu1 %1366  ;;  %v1395_v37 = vpop.permute.xlu2 %1394 }
 0x45f   : > { %v2295_v19 = vpop.eup %2294  ;;  %v1375_v20 = vadd.f32 %v1367_v17, %v1359_v16  ;;  %v2939_v18 = vpop.f32.mrf.mxu3  ;;  %v1408_v43 = vmul.f32 %v1395_v37, %v1384_v36 }
 0x460   : > { %v1516_v22 = vmul.f32 %v2295_v19, %v1511_v60  ;;  %v1513_v23 = vld [vmem:[#allocation7 + $0x10] sm:$0xff]  ;;  %vm1521_vm12 = vweird.f32 %v2295_v19 }
 0x461   : > { %1380 = vst.msk [vmem:[#allocation7 + $0x8] sm:$0xff] %vm824_vm9, %v1375_v20  ;;  %v1469_v24 = vpop.f32.mrf.mxu1  ;;  %2296 = vrcp.f32 %v1513_v23  ;;  %vm1522_vm14 = vmor %vm1520_vm13, %vm1521_vm12  ;;  %v1554_v28 = vand.u32 2147483648, %v1513_v23  ;;  %v1552_v1 = vand.u32 2147483647, %v1513_v23  ;;  %vm1548_vm2 = vweird.f32 %v1513_v23 }
 0x462   : > { %v1494_v26 = vadd.f32 %v1469_v24, %v1409_v21  ;;  %v1373_v27 = vpop.xlane.xlu0 %1372  ;;  %v1517_v29 = vsub.f32 1.0, %v1516_v22 }
 0x463   : > { %v1377_v30 = vadd.f32 %v1373_v27, %v1361_v25  ;;  %v1555_v6 = vor.u32 1.1754944e-38, %v1554_v28  ;;  %vm1553_vm4 = vcmp.eq.f32.partialorder %v1552_v1, 8.507059e+37 }
 0x464   : > { %1498 = vst.msk [vmem:[#allocation8 + $0x10] sm:$0xff] %vm833_vm8, %v1494_v26  ;;  %v1518_v33 = vmul.f32 %v2295_v19, %v1517_v29 }
 0x465   : > { %1382 = vst.msk [vmem:[#allocation7 + $0x18] sm:$0xff] %vm824_vm9, %v1377_v30 }
 0x466   : > { %v1519_v39 = vadd.f32 %v2295_v19, %v1518_v33 }
 0x467   : > { %v2297_v40 = vpop.eup %2296  ;;  %v1433_v41 = vpop.f32.mrf.mxu3 }
 0x468   : > { %v1523_v44 = vsel %vm1522_vm14, %v2295_v19, %v1519_v39  ;;  %v1544_v45 = vmul.f32 %v2297_v40, %v1513_v23  ;;  %v1512_v46 = vld [vmem:[#allocation7 + $0x8] sm:$0xff]  ;;  %vm1549_vm1 = vweird.f32 %v2297_v40 }
 0x469   : > { %v1450_v50 = vpop.f32.mrf.mxu0  ;;  %v1471_v52 = vpop.f32.mrf.mxu1  ;;  %v1528_v38 = vsel %vm1525_vm15, %v1527_v42, %v1523_v44  ;;  %2298 = vrcp.f32 %v1512_v46  ;;  %vm1550_vm3 = vmor %vm1548_vm2, %vm1549_vm1  ;;  %v1538_v54 = vand.u32 2147483647, %v1512_v46  ;;  %v1540_v53 = vand.u32 2147483648, %v1512_v46 }
 0x46a   : > { %v1493_v58 = vadd.f32 %v1450_v50, %v1408_v43  ;;  %1573 = vperm.xlu0 %2263, %v1528_v38   ;;  %v1545_v62 = vsub.f32 1.0, %v1544_v45  ;;  %vm1534_vm7 = vweird.f32 %v1512_v46  ;;  %vm1720_vm15 = vcmask 130048  }
 0x46b   : > { %vm1539_vm9 = vcmp.eq.f32.partialorder %v1538_v54, 8.507059e+37  ;;  %v1541_v2 = vor.u32 1.1754944e-38, %v1540_v53  ;;  %v1509_v30 = vld [vmem:[#allocation8 + $0x10] sm:$0xff]  ;;  %vm1722_vm1 = vcmask 195584  }
 0x46c   : > { %1497 = vst.msk [vmem:[#allocation8 + $0x8] sm:$0xff] %vm833_vm8, %v1493_v58  ;;  %v1546_v0 = vmul.f32 %v2297_v40, %v1545_v62  ;;  %v1514_v3 = vld [vmem:[#allocation7 + $0x18] sm:$0xff] }
 0x46d   : > { %2300 = vrcp.f32 %v1514_v3  ;;  %v1566_v15 = vand.u32 2147483647, %v1514_v3  ;;  %v1568_v16 = vand.u32 2147483648, %v1514_v3  ;;  %vm1562_vm12 = vweird.f32 %v1514_v3 }
 0x46e   : > { %v1547_v31 = vadd.f32 %v2297_v40, %v1546_v0 }
 0x46f   : > { %v2299_v5 = vpop.eup %2298  ;;  %v1569_v24 = vor.u32 1.1754944e-38, %v1568_v16  ;;  %vm1567_vm14 = vcmp.eq.f32.partialorder %v1566_v15, 8.507059e+37 }
 0x470   : > { %v1551_v7 = vsel %vm1550_vm3, %v2297_v40, %v1547_v31  ;;  %v1530_v34 = vmul.f32 %v2299_v5, %v1512_v46  ;;  %vm1535_vm5 = vweird.f32 %v2299_v5 }
 0x471   : > { %v1452_v9 = vpop.f32.mrf.mxu0  ;;  %v1556_v47 = vsel %vm1553_vm4, %v1555_v6, %v1551_v7  ;;  %vm1536_vm10 = vmor %vm1534_vm7, %vm1535_vm5 }
 0x472   : > { %1583 = vperm.xlu1 %2262, %v1556_v47   ;;  %v1531_v51 = vsub.f32 1.0, %v1530_v34 }
 0x473   : > { %v2301_v10 = vpop.eup %2300  ;;  %v1488_v11 = vpop.f32.mrf.mxu2  ;;  %v1508_v44 = vld [vmem:[#allocation8 + $0x8] sm:$0xff] }
 0x474   : > { %v1532_v12 = vmul.f32 %v2299_v5, %v1531_v51  ;;  %v1558_v13 = vmul.f32 %v2301_v10, %v1514_v3  ;;  %vm1563_vm11 = vweird.f32 %v2301_v10 }
 0x475   : > { %v1405_v55 = vpop.permute.xlu0 %1404  ;;  %vm1564_vm13 = vmor %vm1562_vm12, %vm1563_vm11 }
 0x476   : > { %v1410_v59 = vmul.f32 %v1405_v55, %v1386_v49  ;;  %v1390_v61 = vpop.permute.xlu1 %1389  ;;  %v1533_v14 = vadd.f32 %v2299_v5, %v1532_v12  ;;  %v1559_v60 = vsub.f32 1.0, %v1558_v13 }
 0x477   : > { %v1407_v63 = vmul.f32 %v1390_v61, %v1383_v56 }
 0x478   : > { %v1495_v17 = vadd.f32 %v1488_v11, %v1410_v59  ;;  %v1537_v48 = vsel %vm1536_vm10, %v2299_v5, %v1533_v14  ;;  %v1560_v19 = vmul.f32 %v2301_v10, %v1559_v60 }
 0x479   : > { %v1492_v20 = vadd.f32 %v2939_v18, %v1407_v63  ;;  %v1542_v21 = vsel %vm1539_vm9, %v1541_v2, %v1537_v48 }
 0x47a   : > { %1499 = vst.msk [vmem:[#allocation8 + $0x18] sm:$0xff] %vm833_vm8, %v1495_v17  ;;  %1578 = vperm.xlu1 %2262, %v1542_v21   ;;  %v1561_v22 = vadd.f32 %v2301_v10, %v1560_v19 }
 0x47b   : > { %1496 = vst.msk [vmem:[#allocation8] sm:$0xff] %vm833_vm8, %v1492_v20  ;;  %v1490_v23 = vpop.f32.mrf.mxu2 }
 0x47c   : > { %v1565_v25 = vsel %vm1564_vm13, %v2301_v10, %v1561_v22 }
 0x47d   : > { %v1570_v26 = vsel %vm1567_vm14, %v1569_v24, %v1565_v25 }
 0x47e   : > { %1588 = vperm.xlu2 %2261, %v1570_v26  }
 0x481   : > { %v1510_v37 = vld [vmem:[#allocation8 + $0x18] sm:$0xff] }
 0x482   : > { %v1507_v29 = vld [vmem:[#allocation8] sm:$0xff] }
 0x4d8   : > { %v1589_v35 = vpop.permute.xlu2 %1588 }
 0x4d9   : > { %v1594_v39 = vmul.f32 %v1589_v35, %v1510_v37 }
 0x4db   : > { %v1608_v46 = vrot.slane %v1594_v39, 4 }
 0x4dc   : > { %v1574_v27 = vpop.permute.xlu0 %1573 }
 0x4dd   : > { %v1591_v18 = vmul.f32 %v1574_v27, %v1507_v29 }
 0x4df   : > { %v1598_v40 = vrot.slane %v1591_v18, 4 }
 0x4e4   : > { %v1584_v32 = vpop.permute.xlu1 %1583 }
 0x4e5   : > { %v1593_v33 = vmul.f32 %v1584_v32, %v1509_v30 }
 0x4e7   : > { %v1595_v36 = vrot.slane %v1593_v33, 4  ;;  %v1599_v42 = vsel %vm705_vm6, %v1593_v33, %v1598_v40 }
 0x4e8   : > { %v1607_v52 = vperm.slane %v1599_v42, %v2698_v57  ;;  %v2160_v42 = vld [vmem:[%s3093_s9 + $0x8] sm:$0xff] }
 0x4e9   : > { %v1597_v41 = vsel %vm705_vm6, %v1595_v36, %v1591_v18  ;;  %1755 = vmatpush.bf16.msra.mxu3 %v2160_v42 }
 0x4ea   : > { %v1603_v43 = vperm.slane %v1597_v41, %v2698_v57  ;;  %v1634_v1 = vrot.slane %v1607_v52, 4 }
 0x4ec   : > { %v1579_v45 = vpop.permute.xlu1 %1578  ;;  %v1622_v62 = vrot.slane %v1603_v43, 4 }
 0x4ed   : > { %v1592_v50 = vmul.f32 %v1579_v45, %v1508_v44 }
 0x4ef   : > { %v1609_v38 = vsel %vm705_vm6, %v1608_v46, %v1592_v50  ;;  %v1610_v58 = vrot.slane %v1592_v50, 4 }
 0x4f0   : > { %v1615_v28 = vperm.slane %v1609_v38, %v2698_v57 }
 0x4f1   : > { %v1611_v0 = vsel %vm705_vm6, %v1594_v39, %v1610_v58  ;;  %v2269_v58 = vld [vmem:[%s3094_s10] ss:$0 sm:$0xff] }
 0x4f2   : > { %v1619_v3 = vperm.slane %v1611_v0, %v2698_v57  ;;  %v1620_v31 = vrot.slane %v1615_v28, 4  ;;  %v1623_v5 = vsel %vm705_vm6, %v1615_v28, %v1622_v62  ;;  %v2306_v0 = vld [vmem:[%s2649_s22] sm:$0xff] }
 0x4f3   : > { %v1631_v6 = vperm.slane %v1623_v5, %v2703_v4 }
 0x4f4   : > { %v1621_v7 = vsel %vm705_vm6, %v1620_v31, %v1603_v43  ;;  %v1632_v34 = vrot.slane %v1619_v3, 4  ;;  %v1635_v9 = vsel %vm705_vm6, %v1619_v3, %v1634_v1 }
 0x4f5   : > { %v1627_v47 = vperm.slane %v1621_v7, %v2703_v4  ;;  %v1643_v51 = vperm.slane %v1635_v9, %v2703_v4  ;;  %v1646_v54 = vrot.slane %v1631_v6, 4 }
 0x4f6   : > { %v1633_v10 = vsel %vm705_vm6, %v1632_v34, %v1607_v52 }
 0x4f7   : > { %v1639_v11 = vperm.slane %v1633_v10, %v2703_v4  ;;  %v1644_v49 = vrot.slane %v1627_v47, 4  ;;  %v1647_v53 = vsel %vm705_vm6, 0.0, %v1646_v54  ;;  %v1650_v56 = vrot.slane %v1643_v51, 4  ;;  %v2161_v51 = vld [vmem:[#allocation12] sm:$0xff] }
 0x4f8   : > { %v1652_v12 = vsel %vm705_vm6, %v1646_v54, %v1627_v47  ;;  %v1657_v13 = vrot.slane %v1647_v53, 4  ;;  %v2162_v47 = vld [vmem:[#allocation12 + $0x8] sm:$0xff] }
 0x4f9   : > { %v1651_v55 = vsel %vm705_vm6, 0.0, %v1650_v56  ;;  %v1645_v59 = vsel %vm705_vm6, 0.0, %v1644_v49  ;;  %v1648_v61 = vrot.slane %v1639_v11, 4  ;;  %v1656_v14 = vperm.slane %v1652_v12, %v2698_v57  ;;  %1832 = vmatpush.bf16.msrb.mxu0 %v2162_v47  ;;  %v2170_v54 = vld [vmem:[%s3099_s15 + $0x38] sm:$0xff]  ;;  %v2169_v49 = vld [vmem:[%s3099_s15 + $0x30] sm:$0xff] }
 0x4fa   : > { %v1668_v60 = vrot.slane %v1651_v55, 4  ;;  %v1658_v63 = vsel %vm705_vm6, %v1657_v13, %v1645_v59  ;;  %v1663_v2 = vsel %vm705_vm6, %v1650_v56, %v1639_v11  ;;  %1917 = vmatpush.bf16.msra.mxu1 %v2170_v54 }
 0x4fb   : > { %v1649_v15 = vsel %vm705_vm6, 0.0, %v1648_v61  ;;  %v1662_v16 = vperm.slane %v1658_v63, %v2698_v57  ;;  %v1667_v17 = vperm.slane %v1663_v2, %v2698_v57  ;;  %v1676_v48 = vrot.slane %v1656_v14, 4  ;;  %v2271_v63 = vld [vmem:[%s3096_s12] ss:$0 sm:$0xff] }
 0x4fc   : > { %v1669_v19 = vsel %vm705_vm6, %v1668_v60, %v1649_v15 }
 0x4fd   : > { %v1673_v20 = vperm.slane %v1669_v19, %v2698_v57  ;;  %v1677_v21 = vsel %vm705_vm6, %v1662_v16, %v1676_v48  ;;  %v1688_v22 = vrot.slane %v1667_v17, 4  ;;  %v1674_v23 = vrot.slane %v1662_v16, 4  ;;  %1833 = vmatpush.bf16.msrb.mxu0 %v2161_v51  ;;  %v2167_v48 = vld [vmem:[%s3099_s15 + $0x20] sm:$0xff]  ;;  %v2166_v19 = vld [vmem:[%s3099_s15 + $0x18] sm:$0xff] }
 0x4fe   : > { %v1685_v24 = vperm.slane %v1677_v21, %v2703_v4  ;;  %1918 = vmatpush.bf16.msra.mxu1 %v2169_v49  ;;  %v2164_v21 = vld [vmem:[%s3099_s15 + $0x8] sm:$0xff] }
 0x4ff   : > { %v1689_v25 = vsel %vm705_vm6, %v1673_v20, %v1688_v22  ;;  %v1675_v26 = vsel %vm705_vm6, %v1674_v23, %v1656_v14  ;;  %v1686_v27 = vrot.slane %v1673_v20, 4  ;;  %v2165_v20 = vld [vmem:[%s3099_s15 + $0x10] sm:$0xff]  ;;  %v2163_v22 = vld [vmem:[%s3099_s15] sm:$0xff] }
 0x500   : > { %v1697_v29 = vperm.slane %v1689_v25, %v2703_v4  ;;  %v1704_v30 = vrot.slane %v1685_v24, 4  ;;  %v1681_v32 = vperm.slane %v1675_v26, %v2703_v4  ;;  %v2272_v23 = vld [vmem:[%s3098_s14] ss:$0 sm:$0xff] }
 0x501   : > { %v1687_v18 = vsel %vm705_vm6, %v1686_v27, %v1667_v17  ;;  %v2168_v17 = vld [vmem:[%s3099_s15 + $0x28] sm:$0xff] }
 0x502   : > { %v1705_v57 = vsel %vm705_vm6, %v1697_v29, %v1704_v30  ;;  %v1702_v33 = vrot.slane %v1697_v29, 4  ;;  %v1693_v35 = vperm.slane %v1687_v18, %v2703_v4  ;;  %v1700_v36 = vrot.slane %v1681_v32, 4  ;;  %v2159_v4 = vld [vmem:[%s3093_s9] sm:$0xff]  ;;  %1919 = vmatpush.bf16.msra.mxu1 %v2168_v17 }
 0x503   : > { %1715 = vrot.lane.b32.xlu1 %v1705_v57, %s2468_s21  ;;  %1756 = vmatpush.bf16.msra.mxu3 %v2159_v4  ;;  %s1944_s21 = scalar_lea.hbm %s3101_s17, %s2150_s30 }
 0x504   : > { %v1703_v37 = vsel %vm705_vm6, %v1702_v33, %v1685_v24  ;;  %v1698_v39 = vrot.slane %v1693_v35, 4  ;;  %v1701_v40 = vsel %vm705_vm6, %v1693_v35, %v1700_v36  ;;  %s1948_s20 = sshll.u32 %s1944_s21, 4  ;;  %s1949_s20 = int_to_ptr.hbm [resolvable:$true] %s1948_s20 }
 0x505   : > { %1711 = vrot.lane.b32.xlu2 %v1703_v37, %s2469_s24  ;;  %1707 = vrot.lane.b32.xlu0 %v1701_v40, %s2470_s23  ;;  %s600_s24 = scalar_lea.vmem [#allocation14], %s2062_s18  ;;  %s2381_s19 = sshra.s32 %s1949_s20, 4  ;;  %s2382_s19 = int_to_ptr.hbm [resolvable:$true] %s2381_s19 }
 0x506   : > { %v1699_v41 = vsel %vm705_vm6, %v1698_v39, %v1681_v32  ;;  %1920 = vmatpush.bf16.msra.mxu1 %v2167_v48  ;;  %v2273_v39 = vld [vmem:[%s3100_s16] ss:$0 sm:$0xff]  ;;  %s1946_s23 = sshll.u32 %s600_s24, 4  ;;  %s2383_s26 = scalar_lea.hbm %s2382_s19, 8  ;;  %s1947_s23 = int_to_ptr.vmem [resolvable:$true] %s1946_s23 }
 0x507   : > { %p2384_p1 = scmp.ne.s32.totalorder %s2382_s19, %s2383_s26  ;;  %s2387_s18 = scalar_lea.hbm %s3101_s17, 16 }
 0x508   : > { %p2388_p5 = scmp.lt.s32.totalorder %s2382_s19, %s3101_s17  ;;  %p2389_p6 = scmp.lt.s32.totalorder %s2387_s18, %s2383_s26 }
 0x509   : > { %p2385_p2 = pnand %p2384_p1, %p2601_p4 }
 0x50a   : > { %1921 = vmatpush.bf16.msra.mxu1 %v2166_v19  ;;  %p2390_p7 = por %p2389_p6, %p2388_p5 }
 0x50b   : > { %p2386_p3 = pneg %p2385_p2 }
 0x50d   : > { %p2391_p9 = pnand %p2390_p7, %p2386_p3 }
 0x50e   : > { %1922 = vmatpush.bf16.msra.mxu1 %v2165_v20 }
 0x512   : > { %1923 = vmatpush.bf16.msra.mxu1 %v2164_v21 }
 0x516   : > { %1924 = vmatpush.bf16.msra.mxu1 %v2163_v22 }
 0x55f   : > { %v1712_v44 = vpop.permute.xlu2 %1711 }
 0x575   : > { %v1716_v46 = vpop.permute.xlu1 %1715 }
 0x577   : > { %v1708_v43 = vpop.permute.xlu0 %1707 }
 0x578   : > { %v1719_v45 = vsel %vm833_vm8, %v1699_v41, %v1708_v43 }
 0x579   : > { %v1721_v50 = vsel %vm1720_vm15, %v1719_v45, %v1712_v44 }
 0x57a   : > { %v1723_v52 = vsel %vm1722_vm1, %v1721_v50, %v1716_v46 }
 0x57b   : > { %v1724_v38 = vpack.c.bf16 %v1723_v52, %v1723_v52 }
 0x57d   : > { %2107 = vmatmul.msk.bf16.vlgmr.msra.gmra.mxu3 %vm616_vm0, %v1724_v38 }
 0x600   : > { %v1758_v62 = vpop.f32.mrf.mxu3 }
 0x601   : > { %v1759_v28 = vadd.f32 %v2269_v58, %v1758_v62 }
 0x603   : > { %v3000_v1 = vadd.f32 %v2306_v0, %v1759_v28 }
 0x605   : > { %v1765_v3 = vsel %vm616_vm0, %v3000_v1, 0.0 }
 0x606   : > { %1766 = vadd.xlane.f32.xlu0 %v1765_v3 }
 0x608   : > { %v1760_v31 = vpop.f32.mrf.mxu3 }
 0x679   : > { %v1767_v5 = vpop.xlane.xlu0 %1766 }
 0x67a   : > { %v1775_v6 = vmul.f32 %v1767_v5, %v2653_v8 }
 0x67c   : > { %v1776_v7 = vsub.f32 %v3000_v1, %v1775_v6 }
 0x67e   : > { %v1777_v34 = vmul.f32 %v1776_v7, %v1776_v7 }
 0x680   : > { %v1778_v9 = vsel %vm616_vm0, %v1777_v34, 0.0 }
 0x681   : > { %1779 = vadd.xlane.f32.xlu2 %v1778_v9 }
 0x6f4   : > { %v1780_v10 = vpop.xlane.xlu2 %1779 }
 0x6f5   : > { %v1781_v11 = vmul.f32 %v1780_v10, %v2653_v8  ;;  %v2270_v8 = vld [vmem:[%s3095_s11] ss:$0 sm:$0xff] }
 0x6f7   : > { %v1782_v53 = vadd.f32 1e-05, %v1781_v11 }
 0x6f9   : > { %2302 = vrsqrt.f32 %v1782_v53  ;;  %vm1789_vm8 = vweird.f32 %v1782_v53 }
 0x6ff   : > { %v2303_v56 = vpop.eup %2302 }
 0x700   : > { %v1784_v12 = vmul.f32 %v2303_v56, %v1782_v53  ;;  %vm1790_vm6 = vweird.f32 %v2303_v56 }
 0x701   : > { %vm1791_vm2 = vmor %vm1789_vm8, %vm1790_vm6 }
 0x702   : > { %v1785_v13 = vmul.f32 %v2303_v56, %v1784_v12 }
 0x704   : > { %v1786_v55 = vmul.f32 0.5, %v1785_v13 }
 0x706   : > { %v1787_v59 = vsub.f32 1.5, %v1786_v55 }
 0x708   : > { %v1788_v61 = vmul.f32 %v2303_v56, %v1787_v59 }
 0x70a   : > { %v1792_v14 = vsel %vm1791_vm2, %v2303_v56, %v1788_v61 }
 0x70b   : > { %v1793_v60 = vmul.f32 %v1792_v14, %v1776_v7 }
 0x70d   : > { %v1797_v2 = vmul.f32 %v2270_v8, %v1793_v60 }
 0x70f   : > { %v1801_v15 = vadd.f32 %v2271_v63, %v1797_v2 }
 0x711   : > { %v1802_v16 = vpack.c.bf16 %v1801_v15, %v1801_v15 }
 0x713   : > { %2116 = vmatmul.msk.bf16.vlgmr.msrb.gmra.mxu0 %vm616_vm0, %v1802_v16 }
 0x790   : > { %v1835_v24 = vpop.f32.mrf.mxu0 }
 0x791   : > { %v1836_v25 = vadd.f32 %v2272_v23, %v1835_v24 }
 0x793   : > { %v1840_v26 = vmul.f32 0.044715, %v1836_v25  ;;  %v1839_v33 = vmul.f32 0.5, %v1836_v25 }
 0x795   : > { %v1841_v27 = vmul.f32 %v1840_v26, %v1836_v25 }
 0x797   : > { %v1842_v29 = vmul.f32 %v1841_v27, %v1836_v25 }
 0x798   : > { %v1837_v30 = vpop.f32.mrf.mxu0 }
 0x799   : > { %v1843_v32 = vadd.f32 %v1842_v29, %v1836_v25 }
 0x79b   : > { %v1844_v18 = vmul.f32 0.7978846, %v1843_v32 }
 0x79d   : > { %2304 = vtanh.f32 %v1844_v18 }
 0x7a3   : > { %v2305_v57 = vpop.eup %2304 }
 0x7a4   : > { %v1846_v35 = vadd.f32 1.0, %v2305_v57 }
 0x7a6   : > { %v1847_v36 = vmul.f32 %v1846_v35, %v1839_v33 }
 0x7a8   : > { %v1848_v37 = vpack.c.bf16 %v1847_v36, %v1847_v36 }
 0x7aa   : > { %1925 = vmatmul.bf16.vlgmr.msra.gmra.mxu1 %v1848_v37 }
 0x827   : > { %v1926_v40 = vpop.f32.mrf.mxu1 }
 0x828   : > { %v1927_v41 = vadd.f32 %v2273_v39, %v1926_v40 }
 0x82a   : > { %v1930_v42 = vadd.f32 %v1927_v41, %v3000_v1 }
 0x82c   : > { %1931 = vst.msk [vmem:[%s600_s24] sm:$0xff] %vm616_vm0, %v1930_v42 }
 0x82d   : > { %2394 = shalt.err (!%p2391_p9)
}
 0x82e   : > { %2179 = dma.vmem_to_hbm [thread:$0]  (%p2601_p4), %s1947_s23, 128, %s1949_s20, %s1933_s27  }
 0x82f   : > { %v1928_v4 = vpop.f32.mrf.mxu1 }
 0x830 PF: > { %s3130_s0 = sld [smem:[#allocation21_spill]] }
 0x831   : > { %s3131_s21 = sld [smem:[#allocation18_spill]] }
 0x836   : > { %p2196_p10 = scmp.ge.s32.totalorder %s3130_s0, 2 }
 0x837   : > { %s1960_s2 = sand.u32 1, %s3131_s21  }
 0x838   : > { %p2189_p11 = pnand %p2196_p10, %p2608_p8  ;;  %s1961_s30 = scalar_lea.sflag [#allocation11], %s1960_s2 }
 0x83a   : > { %p2190_p12 = pneg %p2189_p11 }
 0x83c   : > { %2428 = dma.done.wait (%p2190_p12), %s1961_s30, 128  }
 0x83d   : > { %2430 = vsyncadd (%p2190_p12), %s1961_s30, 4294967168  ;;  %s32_s29 = sadd.s32 1, %s3130_s0   ;;  %s3133_s19 = sld [smem:[#allocation19_spill]] }
 0x83e   : > { %p29_p13 = scmp.ge.s32.totalorder %s32_s29, 4   ;;  %s3134_s26 = sld [smem:[#allocation25_spill]] }
 0x83f   : > { %s3135_s27 = sld [smem:[#allocation20_spill]]  ;;  %s3137_s24 = smov %s2437_s25 }
 0x840   : > { %s3136_s28 = sld [smem:[#allocation22_spill]]  ;;  %31 = sbr.rel (!%p29_p13) target bundleno = 10 (0xa), region = 152 }
 0x843   : > { %s3138_s25 = smov %s3133_s19 }
 0x845   :  { %1967 = vsyncpa [#allocation10], 1 }
 0x846   :  { %1969 = vsyncpa [#allocation10 + $0x1], 1 }
 0x847   :  { %1970 = vsyncpa [#allocation13], 1 }
 0x848   :  { %1971 = vsyncpa [#allocation11], 1 }
 0x849   :  { %1973 = vsyncpa [#allocation11 + $0x1], 1 }

</bundles_post_ra>
